<compile_context>
chip_gen: v6e
topology: v6e:2x2x1
jax: 0.10.0
libtpu: 0.0.40
codegen_flags: <defaults>
</compile_context>

<pallas_src>
import jax
import jax.numpy as jnp
from jax.experimental import pallas as pl
from jax.experimental.pallas import tpu as pltpu

# Logical dims (match the PyTorch module; D picked as 64)
D_IN = 64
HID = 2
H1 = 200
H2 = 100

# Lane-padded storage dims
D_PAD = 128      # 64  -> 128
H1_PAD = 256     # 200 -> 256
H2_PAD = 128     # 100 -> 128
HEAD_PAD = 128   # fused mean|var head / packed mean|var|z output slab


def _round_up(x, m):
    return (x + m - 1) // m * m


def _vae_kernel(x_ref, eps_ref,
                w1_ref, b1_ref,      # enc_d1 : D_PAD  -> H1_PAD, ReLU
                w2_ref, b2_ref,      # enc_d2 : H1_PAD -> H2_PAD, ReLU
                wh_ref, bh_ref,      # fused enc_mean | enc_var head
                wd1_ref, bd1_ref,    # dec_d1 : HID -> H2_PAD, ReLU (VPU path)
                wd2_ref, bd2_ref,    # dec_d2 : H2_PAD -> H1_PAD, ReLU
                wd3_ref, bd3_ref,    # dec_d3 : H1_PAD -> D_PAD, Sigmoid
                packed_ref, recon_ref):
    f32 = jnp.float32
    bf16 = jnp.bfloat16

    x = x_ref[...]                                                 # (TB, D_PAD) f32

    # ----------------------------- encoder -----------------------------
    h = jnp.dot(x.astype(bf16), w1_ref[...], preferred_element_type=f32)
    h = jnp.maximum(h + b1_ref[...], 0.0)
    h = jnp.dot(h.astype(bf16), w2_ref[...], preferred_element_type=f32)
    h = jnp.maximum(h + b2_ref[...], 0.0)

    # Fused mean|var head: one MXU pass. Lanes [0:HID) = mean,
    # [HID:2*HID) = var_pre, all remaining lanes are exactly 0 (zero-padded
    # weight columns / bias).
    head = jnp.dot(h.astype(bf16), wh_ref[...], preferred_element_type=f32)
    head = head + bh_ref[...]
    col = jax.lax.broadcasted_iota(jnp.int32, head.shape, 1)
    is_var = jnp.logical_and(col >= HID, col < 2 * HID)
    head = jnp.where(is_var, jax.nn.softplus(head), head)         # mean | var | 0...

    # ---------------------- reparameterization (VPU) ----------------------
    mean0, mean1 = head[:, 0:1], head[:, 1:2]
    var0 = head[:, HID:HID + 1]
    var1 = head[:, HID + 1:HID + 2]
    z0 = var0 * eps_ref[:, 0:1] + mean0                            # (TB, 1)
    z1 = var1 * eps_ref[:, 1:2] + mean1

    # Pack mean | var | z into lanes [0:3*HID) of one lane-dense slab so the
    # store is a single unmasked 128-lane vst (no (B, 2) masked stores).
    z_lanes = jnp.where(col == 2 * HID, z0,
                        jnp.where(col == 2 * HID + 1, z1, 0.0))
    packed_ref[...] = head + z_lanes

    # ----------------------------- decoder -----------------------------
    # dec_d1 contracts over only HID = 2 elements: do it on the VPU as two
    # broadcast-FMAs instead of a nearly-empty MXU pass.
    d = z0 * wd1_ref[0:1, :] + z1 * wd1_ref[1:2, :] + bd1_ref[...]
    d = jnp.maximum(d, 0.0)
    d = jnp.dot(d.astype(bf16), wd2_ref[...], preferred_element_type=f32)
    d = jnp.maximum(d + bd2_ref[...], 0.0)
    logits = jnp.dot(d.astype(bf16), wd3_ref[...], preferred_element_type=f32)
    recon_ref[...] = jax.nn.sigmoid(logits + bd3_ref[...])


def vae_forward(x, eps, params, tile_b=128):
    """Runs the fused VAE forward kernel. Returns (mean, var, transformed, out)."""
    B = x.shape[0]
    assert x.shape == (B, D_IN) and eps.shape == (B, HID)

    tile_b = min(tile_b, _round_up(B, 8))          # multiple of 8
    b_pad = _round_up(B, tile_b)
    grid = (b_pad // tile_b,)

    xp = jnp.zeros((b_pad, D_PAD), jnp.float32).at[:B, :D_IN].set(x)
    epsp = jnp.zeros((b_pad, HEAD_PAD), jnp.float32).at[:B, :HID].set(eps)

    def batch_spec(lanes):
        return pl.BlockSpec((tile_b, lanes), lambda i: (i, 0))

    def resident_spec(shape):
        # Same block every grid step -> weight stays VMEM-resident.
        return pl.BlockSpec(shape, lambda i: (0,) * len(shape))

    in_specs = [batch_spec(D_PAD), batch_spec(HEAD_PAD)]
    in_specs += [resident_spec(p.shape) for p in params]

    out_shapes = (jax.ShapeDtypeStruct((b_pad, HEAD_PAD), jnp.float32),
                  jax.ShapeDtypeStruct((b_pad, D_PAD), jnp.float32))
    out_specs = (batch_spec(HEAD_PAD), batch_spec(D_PAD))

    flops = 2 * b_pad * (D_IN * H1 + H1 * H2 + H2 * 2 * HID +
                         HID * H2 + H2 * H1 + H1 * D_IN)
    transcendentals = b_pad * (2 * HID + D_IN)
    bytes_accessed = int(sum(int(p.size) * p.dtype.itemsize for p in params)
                         + int(xp.size) * 4 + int(epsp.size) * 4
                         + b_pad * (HEAD_PAD + D_PAD) * 4)

    packed, recon = pl.pallas_call(
        _vae_kernel,
        grid=grid,
        in_specs=in_specs,
        out_specs=out_specs,
        out_shape=out_shapes,
        compiler_params=pltpu.CompilerParams(
            dimension_semantics=("parallel",)),
        cost_estimate=pl.CostEstimate(flops=flops,
                                      transcendentals=transcendentals,
                                      bytes_accessed=bytes_accessed),
    )(xp, epsp, *params)

    mean = packed[:B, 0:HID]
    var = packed[:B, HID:2 * HID]
    z = packed[:B, 2 * HID:3 * HID]
    out = recon[:B, :D_IN]
    return mean, var, z, out


def init_params(key):
    """Returns (kernel_params, raw_params).

    raw_params: unpadded f32 (W, b) per layer, W stored (in, out) so y = x@W+b
        (equivalent to PyTorch's x @ W.T + b), init U(-1/sqrt(fan_in), +).
    kernel_params: lane-padded storage, MXU weights cast to bf16,
        enc_mean/enc_var fused into one head weight.
    """
    def linear(k, fan_in, fan_out):
        kw, kb = jax.random.split(k)
        bound = 1.0 / float(fan_in) ** 0.5
        w = jax.random.uniform(kw, (fan_in, fan_out), jnp.float32, -bound, bound)
        b = jax.random.uniform(kb, (fan_out,), jnp.float32, -bound, bound)
        return w, b

    def pad(w, b, pad_in, pad_out, w_dtype):
        wp = jnp.zeros((pad_in, pad_out), jnp.float32)
        wp = wp.at[:w.shape[0], :w.shape[1]].set(w)
        bp = jnp.zeros((1, pad_out), jnp.float32).at[0, :b.shape[0]].set(b)
        return wp.astype(w_dtype), bp

    keys = jax.random.split(key, 7)
    w1, b1 = linear(keys[0], D_IN, H1)
    w2, b2 = linear(keys[1], H1, H2)
    wm, bm = linear(keys[2], H2, HID)
    wv, bv = linear(keys[3], H2, HID)
    wd1, bd1 = linear(keys[4], HID, H2)
    wd2, bd2 = linear(keys[5], H2, H1)
    wd3, bd3 = linear(keys[6], H1, D_IN)

    bf16 = jnp.bfloat16
    w1p, b1p = pad(w1, b1, D_PAD, H1_PAD, bf16)
    w2p, b2p = pad(w2, b2, H1_PAD, H2_PAD, bf16)
    # fused mean|var head: columns [0:HID) = mean, [HID:2*HID) = var
    wh = jnp.concatenate([wm, wv], axis=1)
    bh = jnp.concatenate([bm, bv], axis=0)
    whp, bhp = pad(wh, bh, H2_PAD, HEAD_PAD, bf16)
    # dec_d1 stays f32 (VPU path, K = HID = 2)
    wd1p, bd1p = pad(wd1, bd1, HID, H2_PAD, jnp.float32)
    wd2p, bd2p = pad(wd2, bd2, H2_PAD, H1_PAD, bf16)
    wd3p, bd3p = pad(wd3, bd3, H1_PAD, D_PAD, bf16)

    kernel_params = (w1p, b1p, w2p, b2p, whp, bhp,
                     wd1p, bd1p, wd2p, bd2p, wd3p, bd3p)
    raw_params = ((w1, b1), (w2, b2), (wm, bm), (wv, bv),
                  (wd1, bd1), (wd2, bd2), (wd3, bd3))
    return kernel_params, raw_params


def _reference(x, eps, raw):
    """Pure-JAX f32 reference matching the PyTorch forward (z = var*eps + mean)."""
    (w1, b1), (w2, b2), (wm, bm), (wv, bv), (wd1, bd1), (wd2, bd2), (wd3, bd3) = raw
    h = jnp.maximum(x @ w1 + b1, 0.0)
    h = jnp.maximum(h @ w2 + b2, 0.0)
    mean = h @ wm + bm
    var = jax.nn.softplus(h @ wv + bv)
    z = var * eps + mean
    d = jnp.maximum(z @ wd1 + bd1, 0.0)
    d = jnp.maximum(d @ wd2 + bd2, 0.0)
    out = jax.nn.sigmoid(d @ wd3 + bd3)
    return mean, var, z, out


if __name__ == "__main__":
    key = jax.random.PRNGKey(0)
    k_param, k_x, k_eps = jax.random.split(key, 3)

    B = 256  # two batch tiles of 128 -> exercises the pipelined grid
    kernel_params, raw_params = init_params(k_param)
    x = jax.random.uniform(k_x, (B, D_IN), jnp.float32)
    eps = jax.random.normal(k_eps, (B, HID), jnp.float32)

    mean, var, z, out = vae_forward(x, eps, kernel_params, tile_b=128)
    jax.block_until_ready((mean, var, z, out))

    ref = _reference(x, eps, raw_params)
    names = ("mean", "var", "transformed", "out")
    for name, got, want in zip(names, (mean, var, z, out), ref):
        assert got.shape == want.shape, (name, got.shape, want.shape)
        assert got.dtype == want.dtype, (name, got.dtype, want.dtype)
        # bf16 MXU weights vs. pure-f32 reference -> relaxed tolerance.
        assert jnp.allclose(got, want, atol=5e-2, rtol=5e-2), name

    print("KERNEL_OK")
</pallas_src>

<mosaic_0001>
module attributes {stable_mosaic.version = 11 : i64} {
  func.func @_vae_kernel(%arg0: i32, %arg1: memref<128x128xf32, #tpu.memory_space<vmem>>, %arg2: memref<128x128xf32, #tpu.memory_space<vmem>>, %arg3: memref<128x256xbf16, #tpu.memory_space<vmem>>, %arg4: memref<1x256xf32, #tpu.memory_space<vmem>>, %arg5: memref<256x128xbf16, #tpu.memory_space<vmem>>, %arg6: memref<1x128xf32, #tpu.memory_space<vmem>>, %arg7: memref<128x128xbf16, #tpu.memory_space<vmem>>, %arg8: memref<1x128xf32, #tpu.memory_space<vmem>>, %arg9: memref<2x128xf32, #tpu.memory_space<vmem>>, %arg10: memref<1x128xf32, #tpu.memory_space<vmem>>, %arg11: memref<128x256xbf16, #tpu.memory_space<vmem>>, %arg12: memref<1x256xf32, #tpu.memory_space<vmem>>, %arg13: memref<256x128xbf16, #tpu.memory_space<vmem>>, %arg14: memref<1x128xf32, #tpu.memory_space<vmem>>, %arg15: memref<128x128xf32, #tpu.memory_space<vmem>>, %arg16: memref<128x128xf32, #tpu.memory_space<vmem>>) attributes {dimension_semantics = [#tpu.dimension_semantics<parallel>], iteration_bounds = array<i64: 2>, scalar_prefetch = 0 : i64, scratch_operands = 0 : i64, tpu.core_type = #tpu.core_type<tc>, window_params = [{transform_indices = @transform_0, window_bounds = array<i64: 128, 128>}, {transform_indices = @transform_1, window_bounds = array<i64: 128, 128>}, {pipeline_mode = #tpu.pipeline_mode<synchronous>, transform_indices = @transform_2, window_bounds = array<i64: 128, 256>}, {pipeline_mode = #tpu.pipeline_mode<synchronous>, transform_indices = @transform_3, window_bounds = array<i64: 1, 256>}, {pipeline_mode = #tpu.pipeline_mode<synchronous>, transform_indices = @transform_4, window_bounds = array<i64: 256, 128>}, {pipeline_mode = #tpu.pipeline_mode<synchronous>, transform_indices = @transform_5, window_bounds = array<i64: 1, 128>}, {pipeline_mode = #tpu.pipeline_mode<synchronous>, transform_indices = @transform_6, window_bounds = array<i64: 128, 128>}, {pipeline_mode = #tpu.pipeline_mode<synchronous>, transform_indices = @transform_7, window_bounds = array<i64: 1, 128>}, {pipeline_mode = #tpu.pipeline_mode<synchronous>, transform_indices = @transform_8, window_bounds = array<i64: 2, 128>}, {pipeline_mode = #tpu.pipeline_mode<synchronous>, transform_indices = @transform_9, window_bounds = array<i64: 1, 128>}, {pipeline_mode = #tpu.pipeline_mode<synchronous>, transform_indices = @transform_10, window_bounds = array<i64: 128, 256>}, {pipeline_mode = #tpu.pipeline_mode<synchronous>, transform_indices = @transform_11, window_bounds = array<i64: 1, 256>}, {pipeline_mode = #tpu.pipeline_mode<synchronous>, transform_indices = @transform_12, window_bounds = array<i64: 256, 128>}, {pipeline_mode = #tpu.pipeline_mode<synchronous>, transform_indices = @transform_13, window_bounds = array<i64: 1, 128>}, {transform_indices = @transform_14, window_bounds = array<i64: 128, 128>}, {transform_indices = @transform_15, window_bounds = array<i64: 128, 128>}]} {
    %c0 = arith.constant 0 : index
    %c0_0 = arith.constant 0 : index
    %0 = vector.load %arg1[%c0, %c0_0] : memref<128x128xf32, #tpu.memory_space<vmem>>, vector<128x128xf32>
    %1 = arith.truncf %0 : vector<128x128xf32> to vector<128x128xbf16>
    %c0_1 = arith.constant 0 : index
    %c0_2 = arith.constant 0 : index
    %2 = vector.load %arg3[%c0_1, %c0_2] : memref<128x256xbf16, #tpu.memory_space<vmem>>, vector<128x256xbf16>
    %cst = arith.constant dense<0.000000e+00> : vector<128x256xf32>
    %3 = tpu.matmul %1, %2, %cst {dimension_numbers = #tpu.dot_dimension_numbers<[1], [0], [0], [1], [0, 0, 1, 1], [], []>} : vector<128x128xbf16>, vector<128x256xbf16>, vector<128x256xf32> -> vector<128x256xf32>
    %c0_3 = arith.constant 0 : index
    %c0_4 = arith.constant 0 : index
    %4 = vector.load %arg4[%c0_3, %c0_4] : memref<1x256xf32, #tpu.memory_space<vmem>>, vector<1x256xf32>
    %5 = vector.broadcast %4 : vector<1x256xf32> to vector<128x256xf32>
    %6 = arith.addf %3, %5 : vector<128x256xf32>
    %cst_5 = arith.constant 0.000000e+00 : f32
    %7 = vector.broadcast %cst_5 : f32 to vector<128x256xf32>
    %8 = arith.maximumf %6, %7 : vector<128x256xf32>
    %9 = arith.truncf %8 : vector<128x256xf32> to vector<128x256xbf16>
    %c0_6 = arith.constant 0 : index
    %c0_7 = arith.constant 0 : index
    %10 = vector.load %arg5[%c0_6, %c0_7] : memref<256x128xbf16, #tpu.memory_space<vmem>>, vector<256x128xbf16>
    %cst_8 = arith.constant dense<0.000000e+00> : vector<128x128xf32>
    %11 = tpu.matmul %9, %10, %cst_8 {dimension_numbers = #tpu.dot_dimension_numbers<[1], [0], [0], [1], [0, 0, 1, 1], [], []>} : vector<128x256xbf16>, vector<256x128xbf16>, vector<128x128xf32> -> vector<128x128xf32>
    %c0_9 = arith.constant 0 : index
    %c0_10 = arith.constant 0 : index
    %12 = vector.load %arg6[%c0_9, %c0_10] : memref<1x128xf32, #tpu.memory_space<vmem>>, vector<1x128xf32>
    %13 = vector.broadcast %12 : vector<1x128xf32> to vector<128x128xf32>
    %14 = arith.addf %11, %13 : vector<128x128xf32>
    %cst_11 = arith.constant 0.000000e+00 : f32
    %15 = vector.broadcast %cst_11 : f32 to vector<128x128xf32>
    %16 = arith.maximumf %14, %15 : vector<128x128xf32>
    %17 = arith.truncf %16 : vector<128x128xf32> to vector<128x128xbf16>
    %c0_12 = arith.constant 0 : index
    %c0_13 = arith.constant 0 : index
    %18 = vector.load %arg7[%c0_12, %c0_13] : memref<128x128xbf16, #tpu.memory_space<vmem>>, vector<128x128xbf16>
    %cst_14 = arith.constant dense<0.000000e+00> : vector<128x128xf32>
    %19 = tpu.matmul %17, %18, %cst_14 {dimension_numbers = #tpu.dot_dimension_numbers<[1], [0], [0], [1], [0, 0, 1, 1], [], []>} : vector<128x128xbf16>, vector<128x128xbf16>, vector<128x128xf32> -> vector<128x128xf32>
    %c0_15 = arith.constant 0 : index
    %c0_16 = arith.constant 0 : index
    %20 = vector.load %arg8[%c0_15, %c0_16] : memref<1x128xf32, #tpu.memory_space<vmem>>, vector<1x128xf32>
    %21 = vector.broadcast %20 : vector<1x128xf32> to vector<128x128xf32>
    %22 = arith.addf %19, %21 : vector<128x128xf32>
    %23 = tpu.iota {dimensions = array<i32: 1>} : vector<128x128xi32>
    %c2_i32 = arith.constant 2 : i32
    %24 = vector.broadcast %c2_i32 : i32 to vector<128x128xi32>
    %25 = arith.cmpi sge, %23, %24 : vector<128x128xi32>
    %c4_i32 = arith.constant 4 : i32
    %26 = vector.broadcast %c4_i32 : i32 to vector<128x128xi32>
    %27 = arith.cmpi slt, %23, %26 : vector<128x128xi32>
    %28 = arith.andi %25, %27 : vector<128x128xi1>
    %cst_17 = arith.constant 0.000000e+00 : f32
    %29 = vector.broadcast %cst_17 : f32 to vector<128x128xf32>
    %30 = arith.maximumf %22, %29 : vector<128x128xf32>
    %31 = vector.broadcast %cst_17 : f32 to vector<128x128xf32>
    %32 = arith.subf %22, %31 : vector<128x128xf32>
    %33 = arith.cmpf one, %32, %32 : vector<128x128xf32>
    %34 = vector.broadcast %cst_17 : f32 to vector<128x128xf32>
    %35 = arith.addf %22, %34 : vector<128x128xf32>
    %36 = math.absf %32 : vector<128x128xf32>
    %cst_18 = arith.constant 0.000000e+00 : f32
    %37 = vector.broadcast %cst_18 : f32 to vector<128x128xf32>
    %38 = arith.subf %37, %36 : vector<128x128xf32>
    %39 = math.exp %38 : vector<128x128xf32>
    %40 = math.log1p %39 : vector<128x128xf32>
    %41 = arith.addf %30, %40 : vector<128x128xf32>
    %42 = arith.select %33, %35, %41 : vector<128x128xi1>, vector<128x128xf32>
    %43 = arith.select %28, %42, %22 : vector<128x128xi1>, vector<128x128xf32>
    %44 = vector.extract_strided_slice %43 {offsets = [0, 0], sizes = [128, 1], strides = [1, 1]} : vector<128x128xf32> to vector<128x1xf32>
    %45 = vector.extract_strided_slice %43 {offsets = [0, 1], sizes = [128, 1], strides = [1, 1]} : vector<128x128xf32> to vector<128x1xf32>
    %46 = vector.extract_strided_slice %43 {offsets = [0, 2], sizes = [128, 1], strides = [1, 1]} : vector<128x128xf32> to vector<128x1xf32>
    %47 = vector.extract_strided_slice %43 {offsets = [0, 3], sizes = [128, 1], strides = [1, 1]} : vector<128x128xf32> to vector<128x1xf32>
    %c0_19 = arith.constant 0 : index
    %c0_20 = arith.constant 0 : index
    %48 = vector.load %arg2[%c0_19, %c0_20] : memref<128x128xf32, #tpu.memory_space<vmem>>, vector<128x1xf32>
    %49 = arith.mulf %46, %48 : vector<128x1xf32>
    %50 = arith.addf %49, %44 : vector<128x1xf32>
    %c0_21 = arith.constant 0 : index
    %c1 = arith.constant 1 : index
    %51 = vector.load %arg2[%c0_21, %c1] : memref<128x128xf32, #tpu.memory_space<vmem>>, vector<128x1xf32>
    %52 = arith.mulf %47, %51 : vector<128x1xf32>
    %53 = arith.addf %52, %45 : vector<128x1xf32>
    %c4_i32_22 = arith.constant 4 : i32
    %54 = vector.broadcast %c4_i32_22 : i32 to vector<128x128xi32>
    %55 = arith.cmpi eq, %23, %54 : vector<128x128xi32>
    %c5_i32 = arith.constant 5 : i32
    %56 = vector.broadcast %c5_i32 : i32 to vector<128x128xi32>
    %57 = arith.cmpi eq, %23, %56 : vector<128x128xi32>
    %cst_23 = arith.constant 0.000000e+00 : f32
    %58 = vector.shape_cast %53 : vector<128x1xf32> to vector<128x1xf32>
    %59 = vector.broadcast %58 : vector<128x1xf32> to vector<128x128xf32>
    %60 = vector.broadcast %cst_23 : f32 to vector<128x128xf32>
    %61 = arith.select %57, %59, %60 : vector<128x128xi1>, vector<128x128xf32>
    %62 = vector.shape_cast %50 : vector<128x1xf32> to vector<128x1xf32>
    %63 = vector.broadcast %62 : vector<128x1xf32> to vector<128x128xf32>
    %64 = arith.select %55, %63, %61 : vector<128x128xi1>, vector<128x128xf32>
    %65 = arith.addf %43, %64 : vector<128x128xf32>
    %c0_24 = arith.constant 0 : index
    %c0_25 = arith.constant 0 : index
    %66 = vector.load %arg15[%c0_24, %c0_25] : memref<128x128xf32, #tpu.memory_space<vmem>>, vector<128x128xf32>
    tpu.vector_store %arg15[%c0_24, %c0_25], %65 {strides = array<i32>} : memref<128x128xf32, #tpu.memory_space<vmem>>, vector<128x128xf32>,
    %c0_26 = arith.constant 0 : index
    %c0_27 = arith.constant 0 : index
    %67 = vector.load %arg9[%c0_26, %c0_27] : memref<2x128xf32, #tpu.memory_space<vmem>>, vector<1x128xf32>
    %68 = vector.broadcast %50 : vector<128x1xf32> to vector<128x128xf32>
    %69 = vector.broadcast %67 : vector<1x128xf32> to vector<128x128xf32>
    %70 = arith.mulf %68, %69 : vector<128x128xf32>
    %c1_28 = arith.constant 1 : index
    %c0_29 = arith.constant 0 : index
    %71 = vector.load %arg9[%c1_28, %c0_29] : memref<2x128xf32, #tpu.memory_space<vmem>>, vector<1x128xf32>
    %72 = vector.broadcast %53 : vector<128x1xf32> to vector<128x128xf32>
    %73 = vector.broadcast %71 : vector<1x128xf32> to vector<128x128xf32>
    %74 = arith.mulf %72, %73 : vector<128x128xf32>
    %75 = arith.addf %70, %74 : vector<128x128xf32>
    %c0_30 = arith.constant 0 : index
    %c0_31 = arith.constant 0 : index
    %76 = vector.load %arg10[%c0_30, %c0_31] : memref<1x128xf32, #tpu.memory_space<vmem>>, vector<1x128xf32>
    %77 = vector.broadcast %76 : vector<1x128xf32> to vector<128x128xf32>
    %78 = arith.addf %75, %77 : vector<128x128xf32>
    %cst_32 = arith.constant 0.000000e+00 : f32
    %79 = vector.broadcast %cst_32 : f32 to vector<128x128xf32>
    %80 = arith.maximumf %78, %79 : vector<128x128xf32>
    %81 = arith.truncf %80 : vector<128x128xf32> to vector<128x128xbf16>
    %c0_33 = arith.constant 0 : index
    %c0_34 = arith.constant 0 : index
    %82 = vector.load %arg11[%c0_33, %c0_34] : memref<128x256xbf16, #tpu.memory_space<vmem>>, vector<128x256xbf16>
    %cst_35 = arith.constant dense<0.000000e+00> : vector<128x256xf32>
    %83 = tpu.matmul %81, %82, %cst_35 {dimension_numbers = #tpu.dot_dimension_numbers<[1], [0], [0], [1], [0, 0, 1, 1], [], []>} : vector<128x128xbf16>, vector<128x256xbf16>, vector<128x256xf32> -> vector<128x256xf32>
    %c0_36 = arith.constant 0 : index
    %c0_37 = arith.constant 0 : index
    %84 = vector.load %arg12[%c0_36, %c0_37] : memref<1x256xf32, #tpu.memory_space<vmem>>, vector<1x256xf32>
    %85 = vector.broadcast %84 : vector<1x256xf32> to vector<128x256xf32>
    %86 = arith.addf %83, %85 : vector<128x256xf32>
    %cst_38 = arith.constant 0.000000e+00 : f32
    %87 = vector.broadcast %cst_38 : f32 to vector<128x256xf32>
    %88 = arith.maximumf %86, %87 : vector<128x256xf32>
    %89 = arith.truncf %88 : vector<128x256xf32> to vector<128x256xbf16>
    %c0_39 = arith.constant 0 : index
    %c0_40 = arith.constant 0 : index
    %90 = vector.load %arg13[%c0_39, %c0_40] : memref<256x128xbf16, #tpu.memory_space<vmem>>, vector<256x128xbf16>
    %cst_41 = arith.constant dense<0.000000e+00> : vector<128x128xf32>
    %91 = tpu.matmul %89, %90, %cst_41 {dimension_numbers = #tpu.dot_dimension_numbers<[1], [0], [0], [1], [0, 0, 1, 1], [], []>} : vector<128x256xbf16>, vector<256x128xbf16>, vector<128x128xf32> -> vector<128x128xf32>
    %c0_42 = arith.constant 0 : index
    %c0_43 = arith.constant 0 : index
    %92 = vector.load %arg14[%c0_42, %c0_43] : memref<1x128xf32, #tpu.memory_space<vmem>>, vector<1x128xf32>
    %93 = vector.broadcast %92 : vector<1x128xf32> to vector<128x128xf32>
    %94 = arith.addf %91, %93 : vector<128x128xf32>
    %95 = arith.negf %94 : vector<128x128xf32>
    %96 = math.exp %95 : vector<128x128xf32>
    %cst_44 = arith.constant 1.000000e+00 : f32
    %97 = vector.broadcast %cst_44 : f32 to vector<128x128xf32>
    %98 = arith.addf %97, %96 : vector<128x128xf32>
    %99 = arith.divf %97, %98 : vector<128x128xf32>
    %c0_45 = arith.constant 0 : index
    %c0_46 = arith.constant 0 : index
    %100 = vector.load %arg16[%c0_45, %c0_46] : memref<128x128xf32, #tpu.memory_space<vmem>>, vector<128x128xf32>
    tpu.vector_store %arg16[%c0_45, %c0_46], %99 {strides = array<i32>} : memref<128x128xf32, #tpu.memory_space<vmem>>, vector<128x128xf32>,
    return
  }
  func.func @transform_0(%arg0: i32) -> (i32, i32) {
    %c0_i32 = arith.constant 0 : i32
    %c0_i32_0 = arith.constant 0 : i32
    return %arg0, %c0_i32 : i32, i32
  }
  func.func @transform_1(%arg0: i32) -> (i32, i32) {
    %c0_i32 = arith.constant 0 : i32
    %c0_i32_0 = arith.constant 0 : i32
    return %arg0, %c0_i32 : i32, i32
  }
  func.func @transform_2(%arg0: i32) -> (i32, i32) {
    %c0_i32 = arith.constant 0 : i32
    %c0_i32_0 = arith.constant 0 : i32
    %c0_i32_1 = arith.constant 0 : i32
    return %c0_i32, %c0_i32_0 : i32, i32
  }
  func.func @transform_3(%arg0: i32) -> (i32, i32) {
    %c0_i32 = arith.constant 0 : i32
    %c0_i32_0 = arith.constant 0 : i32
    %c0_i32_1 = arith.constant 0 : i32
    return %c0_i32, %c0_i32_0 : i32, i32
  }
  func.func @transform_4(%arg0: i32) -> (i32, i32) {
    %c0_i32 = arith.constant 0 : i32
    %c0_i32_0 = arith.constant 0 : i32
    %c0_i32_1 = arith.constant 0 : i32
    return %c0_i32, %c0_i32_0 : i32, i32
  }
  func.func @transform_5(%arg0: i32) -> (i32, i32) {
    %c0_i32 = arith.constant 0 : i32
    %c0_i32_0 = arith.constant 0 : i32
    %c0_i32_1 = arith.constant 0 : i32
    return %c0_i32, %c0_i32_0 : i32, i32
  }
  func.func @transform_6(%arg0: i32) -> (i32, i32) {
    %c0_i32 = arith.constant 0 : i32
    %c0_i32_0 = arith.constant 0 : i32
    %c0_i32_1 = arith.constant 0 : i32
    return %c0_i32, %c0_i32_0 : i32, i32
  }
  func.func @transform_7(%arg0: i32) -> (i32, i32) {
    %c0_i32 = arith.constant 0 : i32
    %c0_i32_0 = arith.constant 0 : i32
    %c0_i32_1 = arith.constant 0 : i32
    return %c0_i32, %c0_i32_0 : i32, i32
  }
  func.func @transform_8(%arg0: i32) -> (i32, i32) {
    %c0_i32 = arith.constant 0 : i32
    %c0_i32_0 = arith.constant 0 : i32
    %c0_i32_1 = arith.constant 0 : i32
    return %c0_i32, %c0_i32_0 : i32, i32
  }
  func.func @transform_9(%arg0: i32) -> (i32, i32) {
    %c0_i32 = arith.constant 0 : i32
    %c0_i32_0 = arith.constant 0 : i32
    %c0_i32_1 = arith.constant 0 : i32
    return %c0_i32, %c0_i32_0 : i32, i32
  }
  func.func @transform_10(%arg0: i32) -> (i32, i32) {
    %c0_i32 = arith.constant 0 : i32
    %c0_i32_0 = arith.constant 0 : i32
    %c0_i32_1 = arith.constant 0 : i32
    return %c0_i32, %c0_i32_0 : i32, i32
  }
  func.func @transform_11(%arg0: i32) -> (i32, i32) {
    %c0_i32 = arith.constant 0 : i32
    %c0_i32_0 = arith.constant 0 : i32
    %c0_i32_1 = arith.constant 0 : i32
    return %c0_i32, %c0_i32_0 : i32, i32
  }
  func.func @transform_12(%arg0: i32) -> (i32, i32) {
    %c0_i32 = arith.constant 0 : i32
    %c0_i32_0 = arith.constant 0 : i32
    %c0_i32_1 = arith.constant 0 : i32
    return %c0_i32, %c0_i32_0 : i32, i32
  }
  func.func @transform_13(%arg0: i32) -> (i32, i32) {
    %c0_i32 = arith.constant 0 : i32
    %c0_i32_0 = arith.constant 0 : i32
    %c0_i32_1 = arith.constant 0 : i32
    return %c0_i32, %c0_i32_0 : i32, i32
  }
  func.func @transform_14(%arg0: i32) -> (i32, i32) {
    %c0_i32 = arith.constant 0 : i32
    %c0_i32_0 = arith.constant 0 : i32
    return %arg0, %c0_i32 : i32, i32
  }
  func.func @transform_15(%arg0: i32) -> (i32, i32) {
    %c0_i32 = arith.constant 0 : i32
    %c0_i32_0 = arith.constant 0 : i32
    return %arg0, %c0_i32 : i32, i32
  }
}

</mosaic_0001>

<bundles_post_ra>
// kernel: tpu_custom_call.1
= control target key start
LH: loop header
LB: loop body
LE: loop exit
PB: predicated region body
PF: predicated region fallthrough
CT: control target
= control target key end

     0   :  { %s5286_s0 = inlined_call_operand.hbm [shape: f32[256,128], index: 0, kind: input, shape index: {}]   ;;  %s5287_s1 = inlined_call_operand.hbm [shape: f32[256,128], index: 1, kind: input, shape index: {}]   ;;  %s5288_s2 = inlined_call_operand.hbm [shape: bf16[128,256], index: 2, kind: input, shape index: {}]   ;;  %s5289_s3 = inlined_call_operand.vmem [shape: f32[1,256], index: 3, kind: input, shape index: {}]   ;;  %s5290_s4 = inlined_call_operand.hbm [shape: bf16[256,128], index: 4, kind: input, shape index: {}]   ;;  %s5291_s5 = inlined_call_operand.vmem [shape: f32[1,128], index: 5, kind: input, shape index: {}]   ;;  %s5292_s6 = inlined_call_operand.hbm [shape: bf16[128,128], index: 6, kind: input, shape index: {}]   ;;  %s5293_s7 = inlined_call_operand.vmem [shape: f32[1,128], index: 7, kind: input, shape index: {}]   ;;  %s5294_s8 = inlined_call_operand.vmem [shape: f32[2,128], index: 8, kind: input, shape index: {}]   ;;  %s5295_s9 = inlined_call_operand.vmem [shape: f32[1,128], index: 9, kind: input, shape index: {}]   ;;  %s5296_s10 = inlined_call_operand.hbm [shape: bf16[128,256], index: 10, kind: input, shape index: {}]   ;;  %s5297_s11 = inlined_call_operand.vmem [shape: f32[1,256], index: 11, kind: input, shape index: {}]   ;;  %s5298_s12 = inlined_call_operand.hbm [shape: bf16[256,128], index: 12, kind: input, shape index: {}]   ;;  %s5299_s13 = inlined_call_operand.vmem [shape: f32[1,128], index: 13, kind: input, shape index: {}]   ;;  %s5300_s14 = inlined_call_operand.hbm [shape: f32[256,128], index: 14, kind: output, shape index: {0}]   ;;  %s5301_s15 = inlined_call_operand.hbm [shape: f32[256,128], index: 15, kind: output, shape index: {1}]  }
   0x1   :  { %5320 = sst [smem:[#allocation29_spill]] %s5286_s0 }
   0x2   :  { %5321 = sst [smem:[#allocation30_spill]] %s5288_s2 }
   0x3   :  { %5322 = sst [smem:[#allocation31_spill]] %s5290_s4 }
   0x4   :  { %5323 = sst [smem:[#allocation32_spill]] %s5292_s6 }
   0x5   :  { %5324 = sst [smem:[#allocation33_spill]] %s5296_s10 }
   0x6   :  { %5325 = sst [smem:[#allocation34_spill]] %s5298_s12 }
   0x7   :  { %5326 = sst [smem:[#allocation35_spill]] %s5299_s13 }
   0x8   :  { %5327 = sst [smem:[#allocation36_spill]] %s5300_s14 }
   0x9   :  { %5328 = sst [smem:[#allocation37_spill]] %s5301_s15 }
   0xa   :  { %21 = vsyncpa [#allocation3], 0 }
   0xb   :  { %23 = vsyncpa [#allocation3 + $0x1], 0 }
   0xc   :  { %24 = vsyncpa [#allocation6], 0 }
   0xd   :  { %26 = vsyncpa [#allocation6 + $0x1], 0 }
   0xe   :  { %27 = vsyncpa [#allocation9], 0 }
   0xf   :  { %28 = vsyncpa [#allocation12], 0 }
  0x10   :  { %29 = vsyncpa [#allocation4], 0 }
  0x11   :  { %31 = vsyncpa [#allocation4 + $0x1], 0 }
  0x12   :  { %32 = vsyncpa [#allocation16], 0 }
  0x13   :  { %34 = vsyncpa [#allocation16 + $0x1], 0  ;;  %s4056_s18 = smov 0   ;;  %s4058_s19 = smov 0  }
  0x14   :  { %s4060_s20 = smov 0   ;;  %s4062_s21 = smov 0  }
  0x15 LB: > { %5329 = sst [smem:[#allocation24_spill]] %s3943_s18  ;;  %s3957_s22 = smov [#allocation7]   ;;  %s3955_s21 = sphi %s4062_s21, %s5382_s21   ;;  %s3951_s20 = sphi %s4060_s20, %s5384_s20   ;;  %s3947_s19 = sphi %s4058_s19, %s5386_s19   ;;  %s3943_s18 = sphi %s4056_s18, %s5385_s18  }
  0x16   : > { %5330 = sst [smem:[#allocation25_spill]] %s3951_s20  ;;  %s413_s23 = sshll.u32 %s3957_s22, 4  ;;  %s414_s23 = int_to_ptr.vmem [resolvable:$true] %s413_s23 }
  0x17   : > { %s4077_s24 = sadd.s32 4294967295, %s3955_s21   ;;  %p2982_p0 = scmp.ge.s32.totalorder %s3955_s21, 1 }
  0x18   : > { %p5316_p1 = scmp.eq.s32.totalorder %s4077_s24, 0  ;;  %p401_p2 = scmp.lt.s32.totalorder %s3955_s21, 3 }
  0x19   : > { %s3958_s26 = smov [#allocation8]   ;;  %s3959_s29 = smov [#allocation11]  }
  0x1a   : > { %p4082_p3 = pnand %p2982_p0, %p401_p2  ;;  %s429_s27 = sshll.u32 %s3958_s26, 4  ;;  %s4095_s27 = int_to_ptr.vmem [resolvable:$true] %s429_s27 }
  0x1b   : > { %s4097_s30 = sshll.u32 %s3959_s29, 4  ;;  %s3670_s17 = scalar_lea.vmem %s414_s23, 2048  ;;  %s468_s30 = int_to_ptr.vmem [resolvable:$true] %s4097_s30 }
  0x1c   : > { %p3331_p5 = pneg %p4082_p3  ;;  %p3671_p8 = scmp.ne.s32.totalorder %s414_s23, %s3670_s17 }
  0x1d   : > { %p3678_p11 = scmp.lt.s32.totalorder %s414_s23, %s414_s23  ;;  %p3679_p12 = scmp.lt.s32.totalorder %s3670_s17, %s3670_s17 }
  0x1e   : > { %p4091_p6 = pnand %p3331_p5, %p5316_p1 }
  0x1f   : > { %p3680_p13 = por %p3679_p12, %p3678_p11 }
  0x20   : > { %p4101_p7 = pneg %p4091_p6 }
  0x22   : > { %p3673_p9 = pnand %p3671_p8, %p4101_p7 }
  0x24   : > { %p3674_p10 = pneg %p3673_p9 }
  0x26   : > { %p3681_p0 = pnand %p3680_p13, %p3674_p10 }
  0x28   : > { %3684 = shalt.err (!%p3681_p0)
}
  0x29   : > { %s5308_s22 = smov 128   ;;  %s5310_s26 = smov 8  }
  0x2a   : > { %s5334_s2 = sld [smem:[#allocation30_spill]]  ;;  %s3696_s13 = scalar_lea.vmem %s4095_s27, 2048 }
  0x2b   : > { %p3697_p2 = scmp.ne.s32.totalorder %s4095_s27, %s3696_s13  ;;  %p3704_p9 = scmp.lt.s32.totalorder %s4095_s27, %s4095_s27 }
  0x2c   : > { %p3705_p10 = scmp.lt.s32.totalorder %s3696_s13, %s3696_s13 }
  0x2d   : > { %p3699_p5 = pnand %p3697_p2, %p4101_p7 }
  0x2e   : > { %p3706_p11 = por %p3705_p10, %p3704_p9 }
  0x2f   : > { %p3700_p8 = pneg %p3699_p5 }
  0x30   : > { %3334 = dma.hbm_to_vmem [thread:$0]  (!%p4091_p6), %s5334_s2, 2048, %s414_s23, [#allocation6], %s5308_s22, %s5308_s22, %s5310_s26  }
  0x31   : > { %p3707_p12 = pnand %p3706_p11, %p3700_p8 }
  0x33   : > { %3710 = shalt.err (!%p3707_p12)
}
  0x34   : > { %s5304_s17 = smov 64   ;;  %s5306_s14 = smov 4  }
  0x35   : > { %s5335_s4 = sld [smem:[#allocation31_spill]]  ;;  %s3722_s29 = scalar_lea.vmem %s468_s30, 2048 }
  0x36   : > { %p3723_p13 = scmp.ne.s32.totalorder %s468_s30, %s3722_s29  ;;  %p3730_p5 = scmp.lt.s32.totalorder %s468_s30, %s468_s30 }
  0x37   : > { %p3731_p8 = scmp.lt.s32.totalorder %s3722_s29, %s3722_s29 }
  0x38   : > { %p3725_p0 = pnand %p3723_p13, %p4101_p7 }
  0x39   : > { %p3732_p9 = por %p3731_p8, %p3730_p5 }
  0x3a   : > { %p3726_p2 = pneg %p3725_p0 }
  0x3b   : > { %3337 = dma.hbm_to_vmem [thread:$0]  (!%p4091_p6), %s5335_s4, 2048, %s4095_s27, [#allocation9], %s5304_s17, %s5304_s17, %s5306_s14  }
  0x3c   : > { %p3733_p10 = pnand %p3732_p9, %p3726_p2 }
  0x3e   : > { %3736 = shalt.err (!%p3733_p10)
}
  0x3f   : > { %s5336_s10 = sld [smem:[#allocation33_spill]]  ;;  %s3964_s27 = smov [#allocation10]  }
  0x40   : > { %s445_s15 = sshll.u32 %s3964_s27, 4  ;;  %s3965_s23 = smov [#allocation13]   ;;  %s446_s15 = int_to_ptr.vmem [resolvable:$true] %s445_s15 }
  0x41   : > { %s483_s17 = sshll.u32 %s3965_s23, 4  ;;  %s3748_s14 = scalar_lea.vmem %s446_s15, 1024  ;;  %s484_s17 = int_to_ptr.vmem [resolvable:$true] %s483_s17 }
  0x42   : > { %p3749_p11 = scmp.ne.s32.totalorder %s446_s15, %s3748_s14  ;;  %p3756_p0 = scmp.lt.s32.totalorder %s446_s15, %s446_s15 }
  0x43   : > { %p3757_p2 = scmp.lt.s32.totalorder %s3748_s14, %s3748_s14 }
  0x44   : > { %p3751_p12 = pnand %p3749_p11, %p4101_p7 }
  0x45   : > { %3343 = dma.hbm_to_vmem [thread:$0]  (!%p4091_p6), %s5336_s10, 2048, %s468_s30, [#allocation12], %s5308_s22, %s5308_s22, %s5310_s26  }
  0x46   : > { %p3752_p13 = pneg %p3751_p12  ;;  %p3758_p5 = por %p3757_p2, %p3756_p0 }
  0x48   : > { %p3759_p8 = pnand %p3758_p5, %p3752_p13 }
  0x4a   : > { %3762 = shalt.err (!%p3759_p8)
}
  0x4b   : > { %s5337_s2 = smov 4   ;;  %s5338_s29 = smov 64  }
  0x4c   : > { %s5339_s6 = sld [smem:[#allocation32_spill]]  ;;  %s3774_s27 = scalar_lea.vmem %s484_s17, 2048 }
  0x4d   : > { %p3775_p9 = scmp.ne.s32.totalorder %s484_s17, %s3774_s27  ;;  %p3782_p12 = scmp.lt.s32.totalorder %s484_s17, %s484_s17 }
  0x4e   : > { %p3783_p0 = scmp.lt.s32.totalorder %s3774_s27, %s3774_s27 }
  0x4f   : > { %p3777_p10 = pnand %p3775_p9, %p4101_p7 }
  0x50   : > { %p3784_p13 = por %p3783_p0, %p3782_p12 }
  0x51   : > { %p3778_p11 = pneg %p3777_p10 }
  0x52   : > { %3340 = dma.hbm_to_vmem [thread:$0]  (!%p4091_p6), %s5339_s6, 1024, %s446_s15, [#allocation9], %s5338_s29, %s5338_s29, %s5337_s2  }
  0x53   : > { %p3785_p2 = pnand %p3784_p13, %p3778_p11 }
  0x55   : > { %3788 = shalt.err (!%p3785_p2)
}
  0x56   : > { %s5340_s12 = sld [smem:[#allocation34_spill]]  ;;  %s2981_s28 = sadd.s32 4294967294, %s3955_s21  }
  0x57   : > { %s4163_s16 = sadd.s32 1, %s3955_s21   ;;  %s47_s15 = sadd.s32 1, %s3951_s20 }
  0x58   : > { %5341 = sst [smem:[#allocation26_spill]] %s4163_s16  ;;  %s44_s30 = ssub.s32 %s3955_s21, %s4163_s16 }
  0x59   : > { %p54_p7 = scmp.ne.s32.totalorder %s3951_s20, %s3947_s19  ;;  %p45_p5 = scmp.eq.s32.totalorder %s44_s30, 0 }
  0x5a   : > { %p55_p8 = scmp.eq.s32.totalorder %s3955_s21, 0  ;;  %p60_p9 = scmp.ne.s32.totalorder %s3947_s19, %s3943_s18 }
  0x5b   : > { %p362_p10 = scmp.eq.s32.totalorder %s4077_s24, 1  ;;  %p368_p0 = scmp.eq.s32.totalorder %s2981_s28, 1 }
  0x5c   : > { %3346 = dma.hbm_to_vmem [thread:$0]  (!%p4091_p6), %s5340_s12, 2048, %s484_s17, [#allocation12], %s5338_s29, %s5338_s29, %s5337_s2  }
  0x5d   : > { %s4175_s13 = scalar_select %p45_p5, %s3951_s20, %s47_s15  }
  0x5e   : > { %p56_p11 = por %p55_p8, %p54_p7  ;;  %p4179_p12 = por %p5316_p1, %p60_p9 }
  0x5f   : > { %5342 = sst [smem:[#allocation27_spill]] %s4175_s13  ;;  %p4183_p6 = por %p362_p10, %p54_p7 }
  0x60   : > { %s5343_s27 = scalar_select %p4179_p12, 1, 0 }
  0x61   : > { %s5344_s17 = scalar_select %p4183_p6, 1, 0 }
  0x62   : > { %p3366_p13 = scmp.lt.s32.totalorder %s3955_s21, 2  ;;  %s500_s2 = sand.u32 1, %s3951_s20  }
  0x63   : > { %p4189_p2 = por %p368_p0, %p60_p9  ;;  %s4193_s14 = sshll.u32 %s500_s2, 7 }
  0x64   : > { %s3107_s23 = sshll.u32 %s3955_s21, 11  ;;  %s5347_s0 = sld [smem:[#allocation29_spill]] }
  0x65   : > { %s5345_s29 = scalar_select %p4189_p2, 1, 0 }
  0x66   : > { %s504_s26 = scalar_lea.vmem [#allocation2], %s4193_s14  ;;  %p4202_p7 = pnand %p3366_p13, %p56_p11 }
  0x67   : > { %5346 = sst [smem:[#allocation28_spill]] %s5345_s29  ;;  %s511_s28 = sshll.u32 %s504_s26, 4  ;;  %s4206_s28 = int_to_ptr.vmem [resolvable:$true] %s511_s28 }
  0x68   : > { %s4211_s12 = scalar_lea.hbm %s5287_s1, %s3107_s23  ;;  %s4213_s15 = scalar_lea.sflag [#allocation3], %s500_s2 }
  0x69   : > { %p3791_p8 = pneg %p4202_p7 }
  0x6a   : > { %s4199_s22 = scalar_lea.hbm %s5347_s0, %s3107_s23  ;;  %s3794_s20 = scalar_lea.hbm %s5347_s0, 4096 }
  0x6b   : > { %s3789_s30 = scalar_lea.hbm %s4199_s22, 2048  ;;  %p3795_p11 = scmp.lt.s32.totalorder %s4199_s22, %s5347_s0 }
  0x6c   : > { %p3790_p5 = scmp.ne.s32.totalorder %s4199_s22, %s3789_s30  ;;  %p3796_p0 = scmp.lt.s32.totalorder %s3794_s20, %s3789_s30 }
  0x6e   : > { %p3792_p9 = pnand %p3791_p8, %p3790_p5  ;;  %p3797_p13 = por %p3796_p0, %p3795_p11 }
  0x70   : > { %p3793_p10 = pneg %p3792_p9 }
  0x72   : > { %p3798_p4 = pnand %p3797_p13, %p3793_p10 }
  0x74   : > { %3801 = shalt.err (!%p3798_p4)
}
  0x75   : > { %s3802_s6 = scalar_lea.vmem %s4206_s28, 2048  ;;  %s3966_s10 = smov [#allocation2]  }
  0x76   : > { %p3803_p1 = scmp.ne.s32.totalorder %s4206_s28, %s3802_s6  ;;  %s3807_s13 = sshll.u32 %s3966_s10, 4  ;;  %s3808_s13 = int_to_ptr.vmem [resolvable:$false] %s3807_s13 }
  0x77   : > { %s3809_s2 = scalar_lea.vmem %s3808_s13, 4096  ;;  %p3810_p2 = scmp.lt.s32.totalorder %s4206_s28, %s3808_s13 }
  0x78   : > { %p3805_p5 = pnand %p3803_p1, %p3791_p8  ;;  %p3811_p6 = scmp.lt.s32.totalorder %s3809_s2, %s3802_s6 }
  0x7a   : > { %p3806_p9 = pneg %p3805_p5  ;;  %p3812_p12 = por %p3811_p6, %p3810_p2 }
  0x7c   : > { %p3813_p11 = pnand %p3812_p12, %p3806_p9 }
  0x7e   : > { %3816 = shalt.err (!%p3813_p11)
}
  0x7f   : > { %s5349_s20 = smov 8   ;;  %s5350_s16 = smov 128  }
  0x80   : > { %3350 = dma.hbm_to_vmem [thread:$0]  (!%p4202_p7), %s4199_s22, 2048, %s4206_s28, %s4213_s15, %s5350_s16, %s5350_s16, %s5349_s20  }
  0x81   : > { %s525_s29 = scalar_lea.vmem [#allocation5], %s4193_s14  ;;  %s521_s30 = sand.u32 1, %s3955_s21  }
  0x82   : > { %s532_s23 = sshll.u32 %s525_s29, 4  ;;  %s522_s26 = scalar_lea.sflag [#allocation6], %s521_s30  ;;  %s4245_s23 = int_to_ptr.vmem [resolvable:$true] %s532_s23 }
  0x83   : > { %s3817_s6 = scalar_lea.hbm %s4211_s12, 2048  ;;  %s3822_s2 = scalar_lea.hbm %s5287_s1, 4096 }
  0x84   : > { %p3818_p1 = scmp.ne.s32.totalorder %s4211_s12, %s3817_s6  ;;  %p3823_p6 = scmp.lt.s32.totalorder %s4211_s12, %s5287_s1 }
  0x85   : > { %p3824_p2 = scmp.lt.s32.totalorder %s3822_s2, %s3817_s6 }
  0x86   : > { %p3820_p4 = pnand %p3818_p1, %p3791_p8 }
  0x87   : > { %p3825_p10 = por %p3824_p2, %p3823_p6 }
  0x88   : > { %p3821_p12 = pneg %p3820_p4 }
  0x8a   : > { %p3826_p0 = pnand %p3825_p10, %p3821_p12 }
  0x8c   : > { %3829 = shalt.err (!%p3826_p0)
}
  0x8d   : > { %s3830_s22 = scalar_lea.vmem %s4245_s23, 2048  ;;  %s3967_s14 = smov [#allocation5]  }
  0x8e   : > { %p3831_p13 = scmp.ne.s32.totalorder %s4245_s23, %s3830_s22  ;;  %s3835_s28 = sshll.u32 %s3967_s14, 4  ;;  %s3836_s28 = int_to_ptr.vmem [resolvable:$false] %s3835_s28 }
  0x8f   : > { %s3837_s15 = scalar_lea.vmem %s3836_s28, 4096  ;;  %p3838_p11 = scmp.lt.s32.totalorder %s4245_s23, %s3836_s28 }
  0x90   : > { %p3833_p5 = pnand %p3831_p13, %p3791_p8  ;;  %p3839_p1 = scmp.lt.s32.totalorder %s3837_s15, %s3830_s22 }
  0x92   : > { %p3834_p9 = pneg %p3833_p5  ;;  %p3840_p4 = por %p3839_p1, %p3838_p11 }
  0x94   : > { %p3841_p6 = pnand %p3840_p4, %p3834_p9 }
  0x96   : > { %3844 = shalt.err (!%p3841_p6)
}
  0x97   : > { %3353 = dma.hbm_to_vmem [thread:$0]  (!%p4202_p7), %s4211_s12, 2048, %s4245_s23, %s522_s26, %s5350_s16, %s5350_s16, %s5349_s20  }
  0x98   : > { %544 = sbr.rel (%p4082_p3) target bundleno = 1657 (0x679), region = 76  ;;  %s4275_s0 = sand.u32 (!%p4082_p3), 1, %s3947_s19  }
  0x99   : > { %s4278_s18 = sshll.u32 (!%p4082_p3), %s4275_s0, 7  ;;  %s547_s29 = scalar_lea.sflag (!%p4082_p3), [#allocation3], %s4275_s0 }
  0x9a   : > { %s4282_s4 = scalar_lea.vmem (!%p4082_p3), [#allocation2], %s4278_s18  ;;  %p5351_p8 = scmp.ne.s32.totalorder (!%p4082_p3), %s5343_s27, 0 }
  0x9d   : > { %3914 = dma.done.wait (%p5351_p8), %s547_s29, 2048  }
  0x9e   : > { %3916 = vsyncadd (%p5351_p8), %s547_s29, 4294965248  ;;  %s555_s12 = sand.u32 1, %s4077_s24   ;;  %s4290_s20 = scalar_lea.vmem [#allocation5], %s4278_s18 }
  0x9f   : > { %s556_s25 = scalar_lea.sflag [#allocation6], %s555_s12 }
  0xa0   : > { %3918 = dma.done.wait (%p5351_p8), %s556_s25, 2048  }
  0xa1   : > { %3920 = vsyncadd (%p5351_p8), %s556_s25, 4294965248  ;;  %p5352_p3 = scmp.eq.s32.totalorder %s4077_s24, 0 }
  0xa3   : > { %3922 = dma.done.wait (%p5352_p3), [#allocation6], 2048   ;;  %p5353_p7 = pmov %p5352_p3 }
  0xa4   : > { %p5354_p12 = pmov %p5352_p3 }
  0xa5   : > { %3924 = vsyncadd (%p5353_p7), [#allocation6], 4294965248 }
  0xa6   : > { %3926 = dma.done.wait (%p5354_p12), [#allocation9], 3072   ;;  %p5355_p2 = pmov %p5352_p3 }
  0xa8   : > { %3928 = vsyncadd (%p5355_p2), [#allocation9], 4294964224  ;;  %p5356_p10 = pmov %p5355_p2 }
  0xa9   : > { %p5357_p0 = pmov %p5355_p2 }
  0xaa   : > { %3930 = dma.done.wait (%p5356_p10), [#allocation12], 4096  }
  0xab   : > { %3932 = vsyncadd (%p5357_p0), [#allocation12], 4294963200  ;;  %v3968_v0 = vmov 0   ;;  %v3443_v1 = vld [vmem:[#allocation7 + $0x74] ss:$8 sps:$4 sm:$0xff]   ;;  %v3471_v18 = vld [vmem:[#allocation8 + $0x68] sm:$0xff]   ;;  %v683_v63 = vlaneseq }
  0xac   : > { %805 = vmatprep.mubr.bf16.mxu0 %v3968_v0  ;;  %v3445_v2 = vld [vmem:[#allocation7 + $0x70] ss:$8 sps:$4 sm:$0xff]   ;;  %773 = vmatprep.subr.bf16.mxu0 %v3443_v1  ;;  %v3446_v3 = vld [vmem:[#allocation7 + $0x64] ss:$8 sps:$4 sm:$0xff]   ;;  %v3448_v4 = vld [vmem:[#allocation7 + $0x60] ss:$8 sps:$4 sm:$0xff]  }
  0xad   : > { %774 = vmatpush1.bf16.msra.mxu0 %v3445_v2  ;;  %v3449_v5 = vld [vmem:[#allocation7 + $0x54] ss:$8 sps:$4 sm:$0xff]   ;;  %v3451_v6 = vld [vmem:[#allocation7 + $0x50] ss:$8 sps:$4 sm:$0xff]   ;;  %v3452_v7 = vld [vmem:[#allocation7 + $0x44] ss:$8 sps:$4 sm:$0xff]  }
  0xae   : > { %775 = vmatprep.subr.bf16.mxu0 %v3446_v3  ;;  %v3454_v8 = vld [vmem:[#allocation7 + $0x40] ss:$8 sps:$4 sm:$0xff]   ;;  %v3455_v9 = vld [vmem:[#allocation7 + $0x34] ss:$8 sps:$4 sm:$0xff]   ;;  %v3457_v10 = vld [vmem:[#allocation7 + $0x30] ss:$8 sps:$4 sm:$0xff]  }
  0xaf   : > { %v3458_v11 = vld [vmem:[#allocation7 + $0x24] ss:$8 sps:$4 sm:$0xff]   ;;  %v3467_v12 = vld [vmem:[#allocation8 + $0x78] sm:$0xff]   ;;  %v3460_v13 = vld [vmem:[#allocation7 + $0x20] ss:$8 sps:$4 sm:$0xff]   ;;  %v4333_v1 = vshrl.u32 %v683_v63, 7 }
  0xb0   : > { %v3468_v14 = vld [vmem:[#allocation8 + $0x38] sm:$0xff]   ;;  %3111 = vmatprep.subr.bf16.mxu1 %v3467_v12  ;;  %v3469_v16 = vld [vmem:[#allocation8 + $0x70] sm:$0xff]   ;;  %v3464_v20 = vld [vmem:[#allocation7 + $0x4] ss:$8 sps:$4 sm:$0xff]   ;;  %s3969_s23 = smov 2   ;;  %s4942_s13 = scalar_lea.vmem [#allocation14], %s4278_s18 }
  0xb1   : > { %776 = vmatpush1.bf16.msra.mxu0 %v3448_v4  ;;  %v3461_v15 = vld [vmem:[#allocation7 + $0x14] ss:$8 sps:$4 sm:$0xff]   ;;  %3112 = vmatpush3.bf16.msra.mxu1 %v3468_v14  ;;  %v3463_v19 = vld [vmem:[#allocation7 + $0x10] ss:$8 sps:$4 sm:$0xff]   ;;  %v3472_v21 = vld [vmem:[#allocation8 + $0x28] sm:$0xff]   ;;  %v689_v2 = vsub.s32 1, %v4333_v1 }
  0xb2   : > { %777 = vmatprep.subr.bf16.mxu0 %v3449_v5  ;;  %v3470_v17 = vld [vmem:[#allocation8 + $0x30] sm:$0xff]   ;;  %3113 = vmatprep.subr.bf16.mxu1 %v3469_v16  ;;  %v3473_v22 = vld [vmem:[#allocation8 + $0x60] sm:$0xff]   ;;  %v642_v25 = vld [vmem:[%s4282_s4 + $0x8] sm:$0xff]  ;;  %v685_v3 = vsub.s32 0, %v4333_v1  ;;  %s3109_s25 = sshll.u32 %s4077_s24, 11  ;;  %s5374_s16 = sld [smem:[#allocation36_spill]] }
  0xb3   : > { %v3466_v23 = vld [vmem:[#allocation7] ss:$8 sps:$4 sm:$0xff]   ;;  %v3475_v27 = vld [vmem:[#allocation8 + $0x58] sm:$0xff]   ;;  %v643_v30 = vld [vmem:[%s4282_s4 + $0x10] sm:$0xff]  ;;  %s2790_s30 = sshll.u32 %s4942_s13, 4  ;;  %s2772_s26 = scalar_lea.sflag [#allocation4], %s4275_s0  ;;  %s5166_s30 = int_to_ptr.vmem [resolvable:$true] %s2790_s30 }
  0xb4   : > { %v641_v24 = vld [vmem:[%s4282_s4] sm:$0xff]  ;;  %v3476_v28 = vld [vmem:[#allocation8 + $0x18] sm:$0xff]   ;;  %v646_v34 = vld [vmem:[%s4282_s4 + $0x28] sm:$0xff]  ;;  %s3845_s6 = scalar_lea.vmem %s5166_s30, 2048  ;;  %p5375_p5 = scmp.ne.s32.totalorder %s5344_s17, 0 }
  0xb5   : > { %778 = vmatpush1.bf16.msra.mxu0 %v3451_v6  ;;  %3114 = vmatpush3.bf16.msra.mxu1 %v3470_v17  ;;  %v3474_v26 = vld [vmem:[#allocation8 + $0x20] sm:$0xff]   ;;  %v657_v29 = vpack.c.bf16 %v642_v25, %v641_v24  ;;  %v644_v31 = vld [vmem:[%s4282_s4 + $0x18] sm:$0xff]  ;;  %v647_v36 = vld [vmem:[%s4282_s4 + $0x30] sm:$0xff]  ;;  %p3846_p13 = scmp.ne.s32.totalorder %s5166_s30, %s3845_s6  ;;  %s3972_s10 = smov [#allocation14]  }
  0xb6   : > { %779 = vmatprep.subr.bf16.mxu0 %v3452_v7  ;;  %3115 = vmatprep.subr.bf16.mxu1 %v3471_v18  ;;  %v658_v32 = vpack.c.bf16 %v644_v31, %v643_v30  ;;  %v645_v33 = vld [vmem:[%s4282_s4 + $0x20] sm:$0xff]  ;;  %v648_v37 = vld [vmem:[%s4282_s4 + $0x38] sm:$0xff]  ;;  %v650_v40 = vld [vmem:[%s4282_s4 + $0x48] sm:$0xff]  ;;  %s3849_s2 = sshll.u32 %s3972_s10, 4  ;;  %s3850_s2 = int_to_ptr.vmem [resolvable:$false] %s3849_s2 }
  0xb7   : > { %v659_v35 = vpack.c.bf16 %v646_v34, %v645_v33  ;;  %v660_v38 = vpack.c.bf16 %v648_v37, %v647_v36  ;;  %v649_v39 = vld [vmem:[%s4282_s4 + $0x40] sm:$0xff]  ;;  %v651_v42 = vld [vmem:[%s4282_s4 + $0x50] sm:$0xff]  ;;  %v652_v43 = vld [vmem:[%s4282_s4 + $0x58] sm:$0xff]  ;;  %p3847_p9 = pnand %p3846_p13, %p5375_p5  ;;  %s3851_s22 = scalar_lea.vmem %s3850_s2, 4096 }
  0xb8   : > { %v661_v41 = vpack.c.bf16 %v650_v40, %v649_v39  ;;  %v662_v44 = vpack.c.bf16 %v652_v43, %v651_v42  ;;  %v653_v45 = vld [vmem:[%s4282_s4 + $0x60] sm:$0xff]  ;;  %v654_v46 = vld [vmem:[%s4282_s4 + $0x68] sm:$0xff]  ;;  %v655_v48 = vld [vmem:[%s4282_s4 + $0x70] sm:$0xff]  ;;  %p3852_p1 = scmp.lt.s32.totalorder %s5166_s30, %s3850_s2  ;;  %p3853_p4 = scmp.lt.s32.totalorder %s3851_s22, %s3845_s6 }
  0xb9   : > { %780 = vmatpush1.bf16.msra.mxu0 %v3454_v8  ;;  %3116 = vmatpush3.bf16.msra.mxu1 %v3472_v21  ;;  %v663_v47 = vpack.c.bf16 %v654_v46, %v653_v45  ;;  %v656_v49 = vld [vmem:[%s4282_s4 + $0x78] sm:$0xff]  ;;  %v3477_v51 = vld [vmem:[#allocation8 + $0x50] sm:$0xff]   ;;  %v3479_v53 = vld [vmem:[#allocation8 + $0x48] sm:$0xff]   ;;  %p3848_p11 = pneg %p3847_p9 }
  0xba   : > { %781 = vmatprep.subr.bf16.mxu0 %v3455_v9  ;;  %3117 = vmatprep.subr.bf16.mxu1 %v3473_v22  ;;  %v664_v50 = vpack.c.bf16 %v656_v49, %v655_v48  ;;  %v3478_v52 = vld [vmem:[#allocation8 + $0x10] sm:$0xff]   ;;  %v3480_v54 = vld [vmem:[#allocation8 + $0x8] sm:$0xff]   ;;  %v3481_v55 = vld [vmem:[#allocation8 + $0x40] sm:$0xff]   ;;  %p3854_p6 = por %p3853_p4, %p3852_p1 }
  0xbb   : > { %v3482_v56 = vld [vmem:[#allocation8] sm:$0xff]   ;;  %v3483_v57 = vld [vmem:[#allocation10 + $0x38] sm:$0xff]   ;;  %v3484_v58 = vld [vmem:[#allocation10 + $0x30] sm:$0xff]  }
  0xbc   : > { %v3485_v59 = vld [vmem:[#allocation10 + $0x28] sm:$0xff]   ;;  %v3486_v60 = vld [vmem:[#allocation10 + $0x20] sm:$0xff]   ;;  %v3487_v61 = vld [vmem:[#allocation10 + $0x18] sm:$0xff]   ;;  %p3855_p8 = pnand %p3854_p6, %p3848_p11 }
  0xbd   : > { %782 = vmatpush1.bf16.msra.mxu0 %v3457_v10  ;;  %3118 = vmatpush3.bf16.msra.mxu1 %v3474_v26  ;;  %v3488_v62 = vld [vmem:[#allocation10 + $0x10] sm:$0xff]   ;;  %v681_v4 = vld [vmem:[%s5289_s3] sm:$0x3] }
  0xbe   : > { %783 = vmatprep.subr.bf16.mxu0 %v3458_v11  ;;  %3119 = vmatprep.subr.bf16.mxu1 %v3475_v27  ;;  %v4342_v6 = vrot.slane %v681_v4, %v689_v2  ;;  %v4346_v7 = vrot.slane %v681_v4, %v685_v3 }
  0xc1   : > { %784 = vmatpush1.bf16.msra.mxu0 %v3460_v13  ;;  %3120 = vmatpush3.bf16.msra.mxu1 %v3476_v28 }
  0xc2   : > { %785 = vmatprep.subr.bf16.mxu0 %v3461_v15  ;;  %3121 = vmatprep.subr.bf16.mxu1 %v3477_v51 }
  0xc5   : > { %786 = vmatpush1.bf16.msra.mxu0 %v3463_v19  ;;  %3122 = vmatpush3.bf16.msra.mxu1 %v3478_v52 }
  0xc6   : > { %787 = vmatprep.subr.bf16.mxu0 %v3464_v20  ;;  %3123 = vmatprep.subr.bf16.mxu1 %v3479_v53 }
  0xc9   : > { %788 = vmatpush1.bf16.msra.mxu0 %v3466_v23  ;;  %3124 = vmatpush3.bf16.msra.mxu1 %v3480_v54 }
  0xca   : > { %3125 = vmatprep.subr.bf16.mxu1 %v3481_v55  ;;  %3255 = vmatprep.subr.bf16.mxu0 %v3483_v57 }
  0xcc   : > { %806 = vmatmul.mubr.bf16.vlgmr.msra.gmra.mxu0 %v657_v29 }
  0xcd   : > { %815 = vmatprep.mubr.bf16.mxu0 %v3968_v0  ;;  %3126 = vmatpush3.bf16.msra.mxu1 %v3482_v56 }
  0xce   : > { %3256 = vmatpush3.bf16.msra.mxu0 %v3483_v57 }
  0xcf   : > { %3257 = vmatprep.subr.bf16.mxu0 %v3484_v58 }
  0xd2   : > { %3258 = vmatpush3.bf16.msra.mxu0 %v3484_v58 }
  0xd3   : > { %3259 = vmatprep.subr.bf16.mxu0 %v3485_v59 }
  0xd4   : > { %816 = vmatmul.mubr.bf16.gmra.mxu0 %v658_v32 }
  0xd5   : > { %825 = vmatprep.mubr.bf16.mxu0 %v3968_v0 }
  0xd6   : > { %3260 = vmatpush3.bf16.msra.mxu0 %v3485_v59 }
  0xd7   : > { %3261 = vmatprep.subr.bf16.mxu0 %v3486_v60 }
  0xda   : > { %3262 = vmatpush3.bf16.msra.mxu0 %v3486_v60 }
  0xdb   : > { %3263 = vmatprep.subr.bf16.mxu0 %v3487_v61 }
  0xdc   : > { %826 = vmatmul.mubr.bf16.gmra.mxu0 %v659_v35 }
  0xdd   : > { %835 = vmatprep.mubr.bf16.mxu0 %v3968_v0 }
  0xde   : > { %3264 = vmatpush3.bf16.msra.mxu0 %v3487_v61 }
  0xdf   : > { %3265 = vmatprep.subr.bf16.mxu0 %v3488_v62 }
  0xe2   : > { %3266 = vmatpush3.bf16.msra.mxu0 %v3488_v62 }
  0xe4   : > { %836 = vmatmul.mubr.bf16.gmra.mxu0 %v660_v38 }
  0xe5   : > { %845 = vmatprep.mubr.bf16.mxu0 %v3968_v0 }
  0xec   : > { %846 = vmatmul.mubr.bf16.gmra.mxu0 %v661_v41 }
  0xed   : > { %855 = vmatprep.mubr.bf16.mxu0 %v3968_v0 }
  0xf4   : > { %856 = vmatmul.mubr.bf16.gmra.mxu0 %v662_v44 }
  0xf5   : > { %865 = vmatprep.mubr.bf16.mxu0 %v3968_v0 }
  0xfc   : > { %866 = vmatmul.mubr.bf16.gmra.mxu0 %v663_v47 }
  0xfd   : > { %875 = vmatprep.mubr.bf16.mxu0 %v3968_v0 }
 0x104   : > { %876 = vmatmul.mubr.bf16.gmra.mxu0 %v664_v50 }
 0x18c   : > { %v807_v5 = vpop.f32.mrf.mxu0 }
 0x18d   : > { %v808_v12 = vadd.f32 %v807_v5, %v4346_v7 }
 0x18e   : > { %v809_v8 = vpop.f32.mrf.mxu0 }
 0x18f   : > { %v810_v10 = vadd.f32 %v809_v8, %v4342_v6  ;;  %v886_v19 = vmax.f32 %v808_v12, 0.0 }
 0x190   : > { %v811_v9 = vpop.f32.mrf.mxu0 }
 0x191   : > { %v812_v11 = vadd.f32 %v811_v9, %v4346_v7  ;;  %v887_v17 = vmax.f32 %v810_v10, 0.0 }
 0x192   : > { %v813_v13 = vpop.f32.mrf.mxu0 }
 0x193   : > { %v814_v14 = vadd.f32 %v813_v13, %v4342_v6  ;;  %v888_v15 = vmax.f32 %v812_v11, 0.0 }
 0x194   : > { %v817_v16 = vpop.f32.mrf.mxu0 }
 0x195   : > { %v889_v18 = vmax.f32 %v814_v14, 0.0  ;;  %v918_v22 = vpack.c.bf16 %v888_v15, %v886_v19  ;;  %v818_v26 = vadd.f32 %v817_v16, %v4346_v7 }
 0x196   : > { %v819_v20 = vpop.f32.mrf.mxu0 }
 0x197   : > { %v919_v21 = vpack.c.bf16 %v889_v18, %v887_v17  ;;  %v820_v24 = vadd.f32 %v819_v20, %v4342_v6  ;;  %v890_v33 = vmax.f32 %v818_v26, 0.0 }
 0x198   : > { %v821_v23 = vpop.f32.mrf.mxu0 }
 0x199   : > { %v822_v25 = vadd.f32 %v821_v23, %v4346_v7  ;;  %1101 = vmatprep.mubr.bf16.mxu1 %v919_v21  ;;  %v891_v31 = vmax.f32 %v820_v24, 0.0 }
 0x19a   : > { %v823_v27 = vpop.f32.mrf.mxu0  ;;  %1102 = vmatmul.mubr.bf16.vlgmr.msra.gmra.mxu1 %v918_v22 }
 0x19b   : > { %v824_v28 = vadd.f32 %v823_v27, %v4342_v6  ;;  %v892_v29 = vmax.f32 %v822_v25, 0.0 }
 0x19c   : > { %v827_v30 = vpop.f32.mrf.mxu0 }
 0x19d   : > { %v893_v32 = vmax.f32 %v824_v28, 0.0  ;;  %v828_v34 = vadd.f32 %v827_v30, %v4346_v7  ;;  %v920_v38 = vpack.c.bf16 %v892_v29, %v890_v33 }
 0x19e   : > { %v829_v35 = vpop.f32.mrf.mxu0 }
 0x19f   : > { %v921_v36 = vpack.c.bf16 %v893_v32, %v891_v31  ;;  %v830_v37 = vadd.f32 %v829_v35, %v4342_v6  ;;  %v894_v41 = vmax.f32 %v828_v34, 0.0 }
 0x1a0   : > { %v831_v39 = vpop.f32.mrf.mxu0 }
 0x1a1   : > { %v832_v40 = vadd.f32 %v831_v39, %v4346_v7  ;;  %1109 = vmatprep.mubr.bf16.mxu1 %v921_v36  ;;  %v895_v43 = vmax.f32 %v830_v37, 0.0 }
 0x1a2   : > { %v833_v42 = vpop.f32.mrf.mxu0  ;;  %1110 = vmatmul.mubr.bf16.gmra.mxu1 %v920_v38 }
 0x1a3   : > { %v896_v44 = vmax.f32 %v832_v40, 0.0  ;;  %v834_v45 = vadd.f32 %v833_v42, %v4342_v6 }
 0x1a4   : > { %v837_v46 = vpop.f32.mrf.mxu0 }
 0x1a5   : > { %v897_v47 = vmax.f32 %v834_v45, 0.0  ;;  %v922_v48 = vpack.c.bf16 %v896_v44, %v894_v41  ;;  %v838_v49 = vadd.f32 %v837_v46, %v4346_v7 }
 0x1a6   : > { %v839_v50 = vpop.f32.mrf.mxu0 }
 0x1a7   : > { %v923_v51 = vpack.c.bf16 %v897_v47, %v895_v43  ;;  %v840_v52 = vadd.f32 %v839_v50, %v4342_v6  ;;  %v898_v55 = vmax.f32 %v838_v49, 0.0 }
 0x1a8   : > { %v841_v53 = vpop.f32.mrf.mxu0 }
 0x1a9   : > { %v842_v54 = vadd.f32 %v841_v53, %v4346_v7  ;;  %1117 = vmatprep.mubr.bf16.mxu1 %v923_v51  ;;  %v899_v57 = vmax.f32 %v840_v52, 0.0 }
 0x1aa   : > { %v843_v56 = vpop.f32.mrf.mxu0  ;;  %1118 = vmatmul.mubr.bf16.gmra.mxu1 %v922_v48 }
 0x1ab   : > { %v900_v58 = vmax.f32 %v842_v54, 0.0  ;;  %v844_v59 = vadd.f32 %v843_v56, %v4342_v6 }
 0x1ac   : > { %v847_v60 = vpop.f32.mrf.mxu0 }
 0x1ad   : > { %v901_v61 = vmax.f32 %v844_v59, 0.0  ;;  %v924_v62 = vpack.c.bf16 %v900_v58, %v898_v55  ;;  %v848_v4 = vadd.f32 %v847_v60, %v4346_v7 }
 0x1ae   : > { %v849_v5 = vpop.f32.mrf.mxu0 }
 0x1af   : > { %v925_v8 = vpack.c.bf16 %v901_v61, %v899_v57  ;;  %v850_v9 = vadd.f32 %v849_v5, %v4342_v6  ;;  %v902_v12 = vmax.f32 %v848_v4, 0.0  ;;  %v1670_v4 = vld [vmem:[%s4290_s20 + $0x18] sm:$0xff]  ;;  %v1668_v5 = vld [vmem:[%s4290_s20 + $0x8] sm:$0xff] }
 0x1b0   : > { %v851_v10 = vpop.f32.mrf.mxu0  ;;  %1705 = vrot.lane.b32.xlu1 %v1670_v4, %s3969_s23 }
 0x1b1   : > { %v852_v11 = vadd.f32 %v851_v10, %v4346_v7  ;;  %1125 = vmatprep.mubr.bf16.mxu1 %v925_v8  ;;  %v903_v14 = vmax.f32 %v850_v9, 0.0  ;;  %v1672_v8 = vld [vmem:[%s4290_s20 + $0x28] sm:$0xff]  ;;  %v1669_v9 = vld [vmem:[%s4290_s20 + $0x10] sm:$0xff]  ;;  %v1674_v10 = vld [vmem:[%s4290_s20 + $0x38] sm:$0xff] }
 0x1b2   : > { %v853_v13 = vpop.f32.mrf.mxu0  ;;  %1126 = vmatmul.mubr.bf16.gmra.mxu1 %v924_v62  ;;  %v3490_v62 = vld [vmem:[#allocation10] sm:$0xff]  }
 0x1b3   : > { %v904_v15 = vmax.f32 %v852_v11, 0.0  ;;  %v854_v16 = vadd.f32 %v853_v13, %v4342_v6  ;;  %v1671_v11 = vld [vmem:[%s4290_s20 + $0x20] sm:$0xff]  ;;  %v1673_v13 = vld [vmem:[%s4290_s20 + $0x30] sm:$0xff] }
 0x1b4   : > { %v857_v17 = vpop.f32.mrf.mxu0  ;;  %1709 = vrot.lane.b32.xlu1 %v1672_v8, %s3969_s23 }
 0x1b5   : > { %v905_v18 = vmax.f32 %v854_v16, 0.0  ;;  %v926_v19 = vpack.c.bf16 %v904_v15, %v902_v12  ;;  %v858_v20 = vadd.f32 %v857_v17, %v4346_v7  ;;  %v1676_v12 = vld [vmem:[%s4290_s20 + $0x48] sm:$0xff]  ;;  %v1677_v15 = vld [vmem:[%s4290_s20 + $0x50] sm:$0xff] }
 0x1b6   : > { %v859_v21 = vpop.f32.mrf.mxu0 }
 0x1b7   : > { %v927_v22 = vpack.c.bf16 %v905_v18, %v903_v14  ;;  %v860_v23 = vadd.f32 %v859_v21, %v4342_v6  ;;  %v906_v26 = vmax.f32 %v858_v20, 0.0  ;;  %v1675_v14 = vld [vmem:[%s4290_s20 + $0x40] sm:$0xff] }
 0x1b8   : > { %v861_v24 = vpop.f32.mrf.mxu0  ;;  %1713 = vrot.lane.b32.xlu1 %v1674_v10, %s3969_s23 }
 0x1b9   : > { %v862_v25 = vadd.f32 %v861_v24, %v4346_v7  ;;  %1133 = vmatprep.mubr.bf16.mxu1 %v927_v22  ;;  %v907_v28 = vmax.f32 %v860_v23, 0.0 }
 0x1ba   : > { %v863_v27 = vpop.f32.mrf.mxu0  ;;  %1134 = vmatmul.mubr.bf16.gmra.mxu1 %v926_v19  ;;  %v4406_v19 = vld [vmem:[%s5291_s5] ss:$0 sm:$0xff] }
 0x1bb   : > { %v908_v29 = vmax.f32 %v862_v25, 0.0  ;;  %v864_v30 = vadd.f32 %v863_v27, %v4342_v6 }
 0x1bc   : > { %v867_v31 = vpop.f32.mrf.mxu0  ;;  %1717 = vrot.lane.b32.xlu1 %v1676_v12, %s3969_s23 }
 0x1bd   : > { %v909_v32 = vmax.f32 %v864_v30, 0.0  ;;  %v928_v33 = vpack.c.bf16 %v908_v29, %v906_v26  ;;  %v868_v34 = vadd.f32 %v867_v31, %v4346_v7 }
 0x1be   : > { %v869_v35 = vpop.f32.mrf.mxu0 }
 0x1bf   : > { %v929_v36 = vpack.c.bf16 %v909_v32, %v907_v28  ;;  %v870_v37 = vadd.f32 %v869_v35, %v4342_v6  ;;  %v910_v40 = vmax.f32 %v868_v34, 0.0 }
 0x1c0   : > { %v871_v38 = vpop.f32.mrf.mxu0 }
 0x1c1   : > { %v872_v39 = vadd.f32 %v871_v38, %v4346_v7  ;;  %1141 = vmatprep.mubr.bf16.mxu1 %v929_v36  ;;  %v911_v42 = vmax.f32 %v870_v37, 0.0 }
 0x1c2   : > { %v873_v41 = vpop.f32.mrf.mxu0  ;;  %1142 = vmatmul.mubr.bf16.gmra.mxu1 %v928_v33 }
 0x1c3   : > { %v912_v43 = vmax.f32 %v872_v39, 0.0  ;;  %v874_v44 = vadd.f32 %v873_v41, %v4342_v6 }
 0x1c4   : > { %v877_v45 = vpop.f32.mrf.mxu0 }
 0x1c5   : > { %v913_v46 = vmax.f32 %v874_v44, 0.0  ;;  %v930_v47 = vpack.c.bf16 %v912_v43, %v910_v40  ;;  %v878_v48 = vadd.f32 %v877_v45, %v4346_v7 }
 0x1c6   : > { %v879_v49 = vpop.f32.mrf.mxu0 }
 0x1c7   : > { %v931_v50 = vpack.c.bf16 %v913_v46, %v911_v42  ;;  %v880_v51 = vadd.f32 %v879_v49, %v4342_v6  ;;  %v914_v54 = vmax.f32 %v878_v48, 0.0 }
 0x1c8   : > { %v881_v52 = vpop.f32.mrf.mxu0 }
 0x1c9   : > { %v882_v53 = vadd.f32 %v881_v52, %v4346_v7  ;;  %1149 = vmatprep.mubr.bf16.mxu1 %v931_v50  ;;  %v915_v56 = vmax.f32 %v880_v51, 0.0  ;;  %v3489_v7 = vld [vmem:[#allocation10 + $0x8] sm:$0xff]  }
 0x1ca   : > { %v883_v55 = vpop.f32.mrf.mxu0  ;;  %1150 = vmatmul.mubr.bf16.gmra.mxu1 %v930_v47  ;;  %3267 = vmatprep.subr.bf16.mxu0 %v3489_v7 }
 0x1cb   : > { %v916_v57 = vmax.f32 %v882_v53, 0.0  ;;  %v884_v58 = vadd.f32 %v883_v55, %v4342_v6  ;;  %3268 = vmatpush3.bf16.msra.mxu0 %v3489_v7  ;;  %v1667_v6 = vld [vmem:[%s4290_s20] sm:$0xff] }
 0x1cc   : > { %3269 = vmatprep.subr.bf16.mxu0 %v3490_v62  ;;  %1699 = vrot.lane.b32.xlu0 %v1667_v6, %s3969_s23 }
 0x1cd   : > { %v917_v59 = vmax.f32 %v884_v58, 0.0  ;;  %v932_v60 = vpack.c.bf16 %v916_v57, %v914_v54 }
 0x1cf   : > { %v933_v61 = vpack.c.bf16 %v917_v59, %v915_v56  ;;  %3270 = vmatpush3.bf16.msra.mxu0 %v3490_v62 }
 0x1d0   : > { %1701 = vrot.lane.b32.xlu0 %v1668_v5, %s3969_s23 }
 0x1d1   : > { %1157 = vmatprep.mubr.bf16.mxu1 %v933_v61 }
 0x1d2   : > { %1158 = vmatmul.mubr.bf16.gmra.mxu1 %v932_v60 }
 0x1d3   : > { %2298 = vmatprep.mubr.bf16.mxu1 %v3968_v0 }
 0x1d4   : > { %1703 = vrot.lane.b32.xlu0 %v1669_v9, %s3969_s23 }
 0x1d8   : > { %1707 = vrot.lane.b32.xlu0 %v1671_v11, %s3969_s23 }
 0x1dc   : > { %1711 = vrot.lane.b32.xlu0 %v1673_v13, %s3969_s23 }
 0x1e0   : > { %1715 = vrot.lane.b32.xlu0 %v1675_v14, %s3969_s23 }
 0x1e4   : > { %1719 = vrot.lane.b32.xlu0 %v1677_v15, %s3969_s23 }
 0x25a   : > { %v3127_v16 = vpop.f32.mrf.mxu1 }
 0x25c   : > { %v3128_v17 = vpop.f32.mrf.mxu1 }
 0x25d   : > { %v3129_v18 = vadd.f32 %v3128_v17, %v3127_v16 }
 0x25e   : > { %v3130_v20 = vpop.f32.mrf.mxu1 }
 0x25f   : > { %v1104_v22 = vadd.f32 %v3129_v18, %v4406_v19 }
 0x260   : > { %v3131_v21 = vpop.f32.mrf.mxu1 }
 0x261   : > { %v3132_v23 = vadd.f32 %v3131_v21, %v3130_v20  ;;  %v1166_v27 = vmax.f32 %v1104_v22, 0.0 }
 0x262   : > { %v3133_v24 = vpop.f32.mrf.mxu1 }
 0x263   : > { %v1107_v25 = vadd.f32 %v3132_v23, %v4406_v19 }
 0x264   : > { %v3134_v26 = vpop.f32.mrf.mxu1 }
 0x265   : > { %v1167_v28 = vmax.f32 %v1107_v25, 0.0  ;;  %v3135_v29 = vadd.f32 %v3134_v26, %v3133_v24 }
 0x266   : > { %v3136_v30 = vpop.f32.mrf.mxu1 }
 0x267   : > { %v1182_v31 = vpack.c.bf16 %v1167_v28, %v1166_v27  ;;  %v1112_v33 = vadd.f32 %v3135_v29, %v4406_v19 }
 0x268   : > { %v3137_v32 = vpop.f32.mrf.mxu1 }
 0x269   : > { %v3138_v34 = vadd.f32 %v3137_v32, %v3136_v30  ;;  %3271 = vmatprep.mubr.bf16.mxu0 %v1182_v31  ;;  %v1168_v38 = vmax.f32 %v1112_v33, 0.0 }
 0x26a   : > { %v3139_v35 = vpop.f32.mrf.mxu1 }
 0x26b   : > { %v1115_v36 = vadd.f32 %v3138_v34, %v4406_v19 }
 0x26c   : > { %v3140_v37 = vpop.f32.mrf.mxu1 }
 0x26d   : > { %v1169_v39 = vmax.f32 %v1115_v36, 0.0  ;;  %v3141_v40 = vadd.f32 %v3140_v37, %v3139_v35 }
 0x26e   : > { %v3142_v41 = vpop.f32.mrf.mxu1 }
 0x26f   : > { %v1183_v42 = vpack.c.bf16 %v1169_v39, %v1168_v38  ;;  %v1120_v44 = vadd.f32 %v3141_v40, %v4406_v19 }
 0x270   : > { %v3143_v43 = vpop.f32.mrf.mxu1 }
 0x271   : > { %v3144_v45 = vadd.f32 %v3143_v43, %v3142_v41  ;;  %3272 = vmatmul.mubr.bf16.vlgmr.msra.gmra.mxu0 %v1183_v42  ;;  %v1170_v49 = vmax.f32 %v1120_v44, 0.0 }
 0x272   : > { %v3145_v46 = vpop.f32.mrf.mxu1 }
 0x273   : > { %v1123_v47 = vadd.f32 %v3144_v45, %v4406_v19 }
 0x274   : > { %v3146_v48 = vpop.f32.mrf.mxu1 }
 0x275   : > { %v1171_v50 = vmax.f32 %v1123_v47, 0.0  ;;  %v3147_v51 = vadd.f32 %v3146_v48, %v3145_v46  ;;  %v4427_v47 = vld [vmem:[%s5293_s7] ss:$0 sm:$0xff] }
 0x276   : > { %v3148_v52 = vpop.f32.mrf.mxu1 }
 0x277   : > { %v1184_v53 = vpack.c.bf16 %v1171_v50, %v1170_v49  ;;  %v1128_v55 = vadd.f32 %v3147_v51, %v4406_v19 }
 0x278   : > { %v3149_v54 = vpop.f32.mrf.mxu1 }
 0x279   : > { %v3150_v56 = vadd.f32 %v3149_v54, %v3148_v52  ;;  %3275 = vmatprep.mubr.bf16.mxu0 %v1184_v53  ;;  %v1172_v60 = vmax.f32 %v1128_v55, 0.0 }
 0x27a   : > { %v3151_v57 = vpop.f32.mrf.mxu1 }
 0x27b   : > { %v1131_v58 = vadd.f32 %v3150_v56, %v4406_v19 }
 0x27c   : > { %v3152_v59 = vpop.f32.mrf.mxu1 }
 0x27d   : > { %v1173_v61 = vmax.f32 %v1131_v58, 0.0  ;;  %v3153_v7 = vadd.f32 %v3152_v59, %v3151_v57 }
 0x27e   : > { %v3154_v62 = vpop.f32.mrf.mxu1 }
 0x27f   : > { %v1136_v6 = vadd.f32 %v3153_v7, %v4406_v19  ;;  %v1185_v4 = vpack.c.bf16 %v1173_v61, %v1172_v60 }
 0x280   : > { %v3155_v5 = vpop.f32.mrf.mxu1 }
 0x281   : > { %v3156_v8 = vadd.f32 %v3155_v5, %v3154_v62  ;;  %3276 = vmatmul.mubr.bf16.gmra.mxu0 %v1185_v4  ;;  %v1174_v10 = vmax.f32 %v1136_v6, 0.0 }
 0x282   : > { %v3157_v9 = vpop.f32.mrf.mxu1 }
 0x283   : > { %v1139_v11 = vadd.f32 %v3156_v8, %v4406_v19 }
 0x284   : > { %v3158_v12 = vpop.f32.mrf.mxu1 }
 0x285   : > { %v1175_v13 = vmax.f32 %v1139_v11, 0.0  ;;  %v3159_v14 = vadd.f32 %v3158_v12, %v3157_v9 }
 0x286   : > { %v3160_v15 = vpop.f32.mrf.mxu1 }
 0x287   : > { %v1144_v16 = vadd.f32 %v3159_v14, %v4406_v19  ;;  %v1186_v17 = vpack.c.bf16 %v1175_v13, %v1174_v10 }
 0x288   : > { %v3161_v18 = vpop.f32.mrf.mxu1 }
 0x289   : > { %v3162_v20 = vadd.f32 %v3161_v18, %v3160_v15  ;;  %3279 = vmatprep.mubr.bf16.mxu0 %v1186_v17  ;;  %v1176_v22 = vmax.f32 %v1144_v16, 0.0 }
 0x28a   : > { %v3163_v21 = vpop.f32.mrf.mxu1 }
 0x28b   : > { %v1147_v23 = vadd.f32 %v3162_v20, %v4406_v19 }
 0x28c   : > { %v3164_v24 = vpop.f32.mrf.mxu1 }
 0x28d   : > { %v1177_v25 = vmax.f32 %v1147_v23, 0.0  ;;  %v3165_v26 = vadd.f32 %v3164_v24, %v3163_v21 }
 0x28e   : > { %v3166_v27 = vpop.f32.mrf.mxu1 }
 0x28f   : > { %v1152_v28 = vadd.f32 %v3165_v26, %v4406_v19  ;;  %v1187_v29 = vpack.c.bf16 %v1177_v25, %v1176_v22 }
 0x290   : > { %v3167_v30 = vpop.f32.mrf.mxu1 }
 0x291   : > { %v3168_v31 = vadd.f32 %v3167_v30, %v3166_v27  ;;  %3280 = vmatmul.mubr.bf16.gmra.mxu0 %v1187_v29  ;;  %v1178_v33 = vmax.f32 %v1152_v28, 0.0 }
 0x292   : > { %v3169_v32 = vpop.f32.mrf.mxu1 }
 0x293   : > { %v1155_v34 = vadd.f32 %v3168_v31, %v4406_v19 }
 0x294   : > { %v3170_v35 = vpop.f32.mrf.mxu1 }
 0x295   : > { %v1179_v36 = vmax.f32 %v1155_v34, 0.0  ;;  %v3171_v37 = vadd.f32 %v3170_v35, %v3169_v32 }
 0x296   : > { %v3172_v38 = vpop.f32.mrf.mxu1 }
 0x297   : > { %v1160_v39 = vadd.f32 %v3171_v37, %v4406_v19  ;;  %v1188_v40 = vpack.c.bf16 %v1179_v36, %v1178_v33  ;;  %v4469_v33 = vand.u32 127, %v683_v63 }
 0x298   : > { %v3173_v41 = vpop.f32.mrf.mxu1 }
 0x299   : > { %v3174_v42 = vadd.f32 %v3173_v41, %v3172_v38  ;;  %3283 = vmatprep.mubr.bf16.mxu0 %v1188_v40  ;;  %v1180_v43 = vmax.f32 %v1160_v39, 0.0  ;;  %vm1360_vm0 = vcmp.ge.s32.totalorder %v4469_v33, 2  ;;  %vm1361_vm1 = vcmp.lt.s32.totalorder %v4469_v33, 4 }
 0x29a   : > { %vm4526_vm6 = vmand %vm1360_vm0, %vm1361_vm1 }
 0x29b   : > { %v1163_v44 = vadd.f32 %v3174_v42, %v4406_v19 }
 0x29d   : > { %v1181_v45 = vmax.f32 %v1163_v44, 0.0 }
 0x29f   : > { %v1189_v46 = vpack.c.bf16 %v1181_v45, %v1180_v43 }
 0x2a1   : > { %3284 = vmatmul.mubr.bf16.gmra.mxu0 %v1189_v46 }
 0x331   : > { %v3273_v48 = vpop.f32.mrf.mxu0 }
 0x332   : > { %v4430_v49 = vadd.f32 %v3273_v48, %v4427_v47  ;;  %v3970_v48 = vmov 2  }
 0x333   : > { %v1295_v50 = vpop.f32.mrf.mxu0  ;;  %3421 = vset.pattern.permute.xlu0 %v3970_v48 }
 0x334   : > { %v1413_v51 = vand.u32 2147483647, %v4430_v49  ;;  %v4434_v52 = vadd.f32 %v4427_v47, %v1295_v50  ;;  %v1365_v46 = vmax.f32 %v4430_v49, 0.0  ;;  %v3971_v50 = vmov 3  }
 0x335   : > { %v3274_v53 = vpop.f32.mrf.mxu0  ;;  %3420 = vset.pattern.permute.xlu1 %v3971_v50  ;;  %vm1381_vm2 = vcmp.ne.f32.partialorder %v4430_v49, %v4430_v49 }
 0x336   : > { %v1429_v19 = vsub.f32 0.0, %v1413_v51  ;;  %v1411_v54 = vand.u32 2147483647, %v4434_v52  ;;  %v4438_v55 = vadd.f32 %v3274_v53, %v4427_v47  ;;  %v1363_v53 = vmax.f32 %v4434_v52, 0.0 }
 0x337   : > { %v1298_v56 = vpop.f32.mrf.mxu0  ;;  %vm1379_vm3 = vcmp.ne.f32.partialorder %v4434_v52, %v4434_v52 }
 0x338   : > { %v1447_v57 = vmul.f32 1.442695, %v1429_v19  ;;  %v1427_v58 = vsub.f32 0.0, %v1411_v54  ;;  %v1414_v59 = vand.u32 2147483647, %v4438_v55  ;;  %v4442_v60 = vadd.f32 %v4427_v47, %v1298_v56 }
 0x339   : > { %v1366_v56 = vmax.f32 %v4438_v55, 0.0  ;;  %vm1382_vm9 = vcmp.ne.f32.partialorder %v4438_v55, %v4438_v55 }
 0x33a   : > { %3531 = vpow2.f32 %v1447_v57  ;;  %v1443_v61 = vmul.f32 1.442695, %v1427_v58  ;;  %v1430_v7 = vsub.f32 0.0, %v1414_v59  ;;  %v1412_v62 = vand.u32 2147483647, %v4442_v60 }
 0x33b   : > { %v1364_v59 = vmax.f32 %v4442_v60, 0.0  ;;  %vm1380_vm10 = vcmp.ne.f32.partialorder %v4442_v60, %v4442_v60 }
 0x33c   : > { %3533 = vpow2.f32 %v1443_v61  ;;  %v1449_v6 = vmul.f32 1.442695, %v1430_v7  ;;  %v1428_v4 = vsub.f32 0.0, %v1412_v62 }
 0x33e   : > { %v1445_v5 = vmul.f32 1.442695, %v1428_v4  ;;  %3535 = vpow2.f32 %v1449_v6 }
 0x340   : > { %3537 = vpow2.f32 %v1445_v5 }
 0x341   : > { %v3277_v8 = vpop.f32.mrf.mxu0 }
 0x342   : > { %v4446_v9 = vadd.f32 %v3277_v8, %v4427_v47 }
 0x343   : > { %v1311_v10 = vpop.f32.mrf.mxu0 }
 0x344   : > { %v1417_v11 = vand.u32 2147483647, %v4446_v9  ;;  %v4450_v12 = vadd.f32 %v4427_v47, %v1311_v10  ;;  %vm1385_vm11 = vcmp.ne.f32.partialorder %v4446_v9, %v4446_v9 }
 0x345   : > { %v3278_v13 = vpop.f32.mrf.mxu0 }
 0x346   : > { %v1415_v14 = vand.u32 2147483647, %v4450_v12  ;;  %v1433_v16 = vsub.f32 0.0, %v1417_v11  ;;  %v4456_v17 = vadd.f32 %v3278_v13, %v4427_v47  ;;  %vm1383_vm13 = vcmp.ne.f32.partialorder %v4450_v12, %v4450_v12 }
 0x347   : > { %v4453_v15 = vpop.eup %3531  ;;  %v1314_v18 = vpop.f32.mrf.mxu0 }
 0x348   : > { %v1431_v20 = vsub.f32 0.0, %v1415_v14  ;;  %v4459_v21 = vadd.f32 %v4427_v47, %v1314_v18  ;;  %v1493_v23 = vadd.f32 1.0, %v4453_v15  ;;  %v1455_v26 = vmul.f32 1.442695, %v1433_v16 }
 0x349   : > { %v3534_v22 = vpop.eup %3533  ;;  %v1418_v27 = vand.u32 2147483647, %v4456_v17  ;;  %v1496_v39 = vmul.f32 -0.5, %v4453_v15  ;;  %v1499_v63 = vand.u32 2147483647, %v4453_v15  ;;  %vm1386_vm15 = vcmp.ne.f32.partialorder %v4456_v17, %v4456_v17 }
 0x34a   : > { %v1451_v24 = vmul.f32 1.442695, %v1431_v20  ;;  %v1416_v25 = vand.u32 2147483647, %v4459_v21  ;;  %v1475_v28 = vadd.f32 1.0, %v3534_v22  ;;  %3539 = vlog2.f32 %v1493_v23 }
 0x34b   : > { %v4464_v29 = vpop.eup %3535  ;;  %v1434_v35 = vsub.f32 0.0, %v1418_v27  ;;  %v1478_v38 = vmul.f32 -0.5, %v3534_v22  ;;  %v1481_v43 = vand.u32 2147483647, %v3534_v22  ;;  %v1497_v54 = vadd.f32 1.0, %v1496_v39 }
 0x34c   : > { %3541 = vpow2.f32 %v1451_v24  ;;  %v1432_v30 = vsub.f32 0.0, %v1416_v25  ;;  %v1502_v36 = vadd.f32 1.0, %v4464_v29  ;;  %vm4503_vm5 = vcmp.lt.f32.partialorder %v1499_v63, 0.0004427343 }
 0x34d   : > { %v4466_v31 = vpop.eup %3537  ;;  %3543 = vlog2.f32 %v1475_v28  ;;  %v1457_v41 = vmul.f32 1.442695, %v1434_v35  ;;  %v1479_v19 = vadd.f32 1.0, %v1478_v38  ;;  %vm4499_vm4 = vcmp.lt.f32.partialorder %v1481_v43, 0.0004427343 }
 0x34e   : > { %v1453_v32 = vmul.f32 1.442695, %v1432_v30  ;;  %v1484_v34 = vadd.f32 1.0, %v4466_v31  ;;  %3545 = vpow2.f32 %v1455_v26  ;;  %v1487_v61 = vmul.f32 -0.5, %v4466_v31 }
 0x34f   : > { %v1505_v13 = vmul.f32 -0.5, %v4464_v29  ;;  %v1480_v16 = vmul.f32 %v3534_v22, %v1479_v19  ;;  %v1490_v18 = vand.u32 2147483647, %v4466_v31  ;;  %v1498_v23 = vmul.f32 %v4453_v15, %v1497_v54 }
 0x350   : > { %3547 = vpow2.f32 %v1453_v32  ;;  %v1488_v28 = vadd.f32 1.0, %v1487_v61  ;;  %vm1384_vm0 = vcmp.ne.f32.partialorder %v4459_v21, %v4459_v21 }
 0x351   : > { %v3281_v37 = vpop.f32.mrf.mxu0  ;;  %3549 = vlog2.f32 %v1484_v34  ;;  %v1506_v38 = vadd.f32 1.0, %v1505_v13  ;;  %vm4534_vm7 = vcmp.lt.f32.partialorder %v1490_v18, 0.0004427343 }
 0x352   : > { %v4475_v40 = vadd.f32 %v3281_v37, %v4427_v47  ;;  %3551 = vlog2.f32 %v1502_v36  ;;  %v1489_v19 = vmul.f32 %v4466_v31, %v1488_v28 }
 0x353   : > { %v1327_v42 = vpop.f32.mrf.mxu0  ;;  %3553 = vpow2.f32 %v1457_v41  ;;  %v1507_v62 = vmul.f32 %v4464_v29, %v1506_v38 }
 0x354   : > { %v1421_v44 = vand.u32 2147483647, %v4475_v40  ;;  %v4481_v45 = vadd.f32 %v4427_v47, %v1327_v42  ;;  %v1508_v42 = vand.u32 2147483647, %v4464_v29 }
 0x355   : > { %v3282_v51 = vpop.f32.mrf.mxu0 }
 0x356   : > { %v1419_v57 = vand.u32 2147483647, %v4481_v45  ;;  %v4493_v58 = vadd.f32 %v3282_v51, %v4427_v47  ;;  %v1437_v7 = vsub.f32 0.0, %v1421_v44  ;;  %vm1509_vm8 = vcmp.lt.f32.partialorder %v1508_v42, 0.0004427343 }
 0x357   : > { %v1330_v6 = vpop.f32.mrf.mxu0  ;;  %v3540_v5 = vpop.eup %3539 }
 0x358   : > { %v1435_v8 = vsub.f32 0.0, %v1419_v57  ;;  %v1422_v10 = vand.u32 2147483647, %v4493_v58  ;;  %v4509_v11 = vadd.f32 %v4427_v47, %v1330_v6  ;;  %v1495_v20 = vmul.f32 0.6931472, %v3540_v5 }
 0x359   : > { %v4512_v14 = vpop.eup %3541  ;;  %v1463_v30 = vmul.f32 1.442695, %v1437_v7 }
 0x35a   : > { %v3544_v24 = vpop.eup %3543  ;;  %v1459_v25 = vmul.f32 1.442695, %v1435_v8  ;;  %v1438_v26 = vsub.f32 0.0, %v1422_v10  ;;  %v1420_v27 = vand.u32 2147483647, %v4509_v11  ;;  %v1501_v34 = vsel %vm4503_vm5, %v1498_v23, %v1495_v20  ;;  %v1679_v8 = vld [vmem:[%s4290_s20 + $0x60] sm:$0xff] }
 0x35b   : > { %v1477_v32 = vmul.f32 0.6931472, %v3544_v24  ;;  %v1511_v35 = vadd.f32 1.0, %v4512_v14  ;;  %v4520_v36 = vpop.eup %3545  ;;  %v1621_v37 = vadd.f32 %v1501_v34, %v1365_v46 }
 0x35c   : > { %3555 = vpow2.f32 %v1459_v25  ;;  %v1436_v22 = vsub.f32 0.0, %v1420_v27  ;;  %v1465_v44 = vmul.f32 1.442695, %v1438_v26  ;;  %v1529_v6 = vadd.f32 1.0, %v4520_v36  ;;  %v1681_v25 = vld [vmem:[%s4290_s20 + $0x70] sm:$0xff] }
 0x35d   : > { %v4530_v39 = vpop.eup %3547  ;;  %v1483_v63 = vsel %vm4499_vm4, %v1480_v16, %v1477_v32  ;;  %3557 = vlog2.f32 %v1511_v35  ;;  %v1637_v46 = vsel %vm1381_vm2, %v4430_v49, %v1621_v37  ;;  %v1514_v35 = vmul.f32 -0.5, %v4512_v14 }
 0x35e   : > { %v3550_v43 = vpop.eup %3549  ;;  %v1619_v51 = vadd.f32 %v1483_v63, %v1363_v53  ;;  %3559 = vpow2.f32 %v1463_v30  ;;  %v1461_v57 = vmul.f32 1.442695, %v1436_v22  ;;  %v4547_v7 = vsel %vm4526_vm6, %v1637_v46, %v4430_v49 }
 0x35f   : > { %v3552_v54 = vpop.eup %3551  ;;  %v1486_v61 = vmul.f32 0.6931472, %v3550_v43  ;;  %1783 = vrot.lane.b32.xlu0 %v4547_v7, %s3969_s23  ;;  %v1520_v10 = vadd.f32 1.0, %v4530_v39  ;;  %3561 = vpow2.f32 %v1465_v44  ;;  %v1532_v43 = vmul.f32 -0.5, %v4520_v36 }
 0x360   : > { %v1635_v31 = vsel %vm1379_vm3, %v4434_v52, %v1619_v51  ;;  %v1504_v53 = vmul.f32 0.6931472, %v3552_v54  ;;  %3563 = vpow2.f32 %v1461_v57  ;;  %v4573_v20 = vpop.eup %3553  ;;  %v1515_v54 = vadd.f32 1.0, %v1514_v35 }
 0x361   : > { %v4560_v4 = vsel %vm4526_vm6, %v1635_v31, %v4434_v52  ;;  %v1492_v49 = vsel %vm4534_vm7, %v1489_v19, %v1486_v61  ;;  %v3285_v5 = vpop.f32.mrf.mxu0  ;;  %3565 = vlog2.f32 %v1529_v6  ;;  %v1517_v61 = vand.u32 2147483647, %v4512_v14  ;;  %v1678_v31 = vld [vmem:[%s4290_s20 + $0x58] sm:$0xff] }
 0x362   : > { %v1620_v13 = vadd.f32 %v1492_v49, %v1364_v59  ;;  %v4567_v29 = vadd.f32 %v3285_v5, %v4427_v47  ;;  %1779 = vrot.lane.b32.xlu1 %v4560_v4, %s3969_s23  ;;  %v1510_v16 = vsel %vm1509_vm8, %v1507_v62, %v1504_v53  ;;  %3567 = vlog2.f32 %v1520_v10 }
 0x363   : > { %v1622_v52 = vadd.f32 %v1510_v16, %v1366_v56  ;;  %v1343_v18 = vpop.f32.mrf.mxu0  ;;  %1723 = vrot.lane.b32.xlu0 %v1679_v8, %s3969_s23  ;;  %v1369_v6 = vmax.f32 %v4446_v9, 0.0  ;;  %v1533_v49 = vadd.f32 1.0, %v1532_v43  ;;  %v1516_v8 = vmul.f32 %v4512_v14, %v1515_v54  ;;  %v1680_v16 = vld [vmem:[%s4290_s20 + $0x68] sm:$0xff] }
 0x364   : > { %v1425_v23 = vand.u32 2147483647, %v4567_v29  ;;  %v4580_v59 = vadd.f32 %v4427_v47, %v1343_v18  ;;  %v1636_v26 = vsel %vm1380_vm10, %v4442_v60, %v1620_v13  ;;  %v1523_v10 = vmul.f32 -0.5, %v4530_v39 }
 0x365   : > { %v1638_v24 = vsel %vm1382_vm9, %v4438_v55, %v1622_v52  ;;  %v3286_v56 = vpop.f32.mrf.mxu0  ;;  %v4609_v41 = vsel %vm4526_vm6, %v1636_v26, %v4442_v60  ;;  %v1535_v13 = vand.u32 2147483647, %v4520_v36  ;;  %vm4635_vm12 = vcmp.lt.f32.partialorder %v1517_v61, 0.0004427343 }
 0x366   : > { %v1441_v27 = vsub.f32 0.0, %v1425_v23  ;;  %v4590_v28 = vsel %vm4526_vm6, %v1638_v24, %v4438_v55  ;;  %v1423_v30 = vand.u32 2147483647, %v4580_v59  ;;  %v4594_v32 = vadd.f32 %v3286_v56, %v4427_v47 }
 0x367   : > { %1785 = vrot.lane.b32.xlu1 %v4590_v28, %s3969_s23  ;;  %v1346_v34 = vpop.f32.mrf.mxu0  ;;  %1727 = vrot.lane.b32.xlu0 %v1681_v25, %s3969_s23  ;;  %v1538_v55 = vadd.f32 1.0, %v4573_v20  ;;  %v1367_v24 = vmax.f32 %v4450_v12, 0.0  ;;  %v1541_v14 = vmul.f32 -0.5, %v4573_v20  ;;  %vm1536_vm14 = vcmp.lt.f32.partialorder %v1535_v13, 0.0004427343 }
 0x368   : > { %v1471_v22 = vmul.f32 1.442695, %v1441_v27  ;;  %v1439_v37 = vsub.f32 0.0, %v1423_v30  ;;  %v4601_v38 = vadd.f32 %v4427_v47, %v1346_v34  ;;  %v1426_v42 = vand.u32 2147483647, %v4594_v32 }
 0x369   : > { %v4604_v63 = vpop.eup %3555  ;;  %v1370_v27 = vmax.f32 %v4456_v17, 0.0  ;;  %v1368_v34 = vmax.f32 %v4459_v21, 0.0  ;;  %vm1389_vm4 = vcmp.ne.f32.partialorder %v4475_v40, %v4475_v40  ;;  %vm1387_vm7 = vcmp.ne.f32.partialorder %v4481_v45, %v4481_v45 }
 0x36a   : > { %v3558_v44 = vpop.eup %3557  ;;  %3569 = vpow2.f32 %v1471_v22  ;;  %v1467_v51 = vmul.f32 1.442695, %v1439_v37  ;;  %v1424_v47 = vand.u32 2147483647, %v4601_v38  ;;  %v1547_v19 = vadd.f32 1.0, %v4604_v63 }
 0x36b   : > { %v1442_v46 = vsub.f32 0.0, %v1426_v42  ;;  %1781 = vrot.lane.b32.xlu1 %v4609_v41, %s3969_s23  ;;  %3571 = vlog2.f32 %v1538_v55  ;;  %v4617_v60 = vpop.eup %3559  ;;  %v1513_v53 = vmul.f32 0.6931472, %v3558_v44  ;;  %v1534_v22 = vmul.f32 %v4520_v36, %v1533_v49 }
 0x36c   : > { %3573 = vpow2.f32 %v1467_v51  ;;  %v1440_v57 = vsub.f32 0.0, %v1424_v47  ;;  %v4624_v5 = vpop.eup %3561  ;;  %v1565_v52 = vadd.f32 1.0, %v4617_v60  ;;  %v1524_v37 = vadd.f32 1.0, %v1523_v10 }
 0x36d   : > { %3575 = vlog2.f32 %v1547_v19  ;;  %v1473_v62 = vmul.f32 1.442695, %v1442_v46  ;;  %v4632_v18 = vpop.eup %3563  ;;  %v1519_v26 = vsel %vm4635_vm12, %v1516_v8, %v1513_v53  ;;  %v1526_v55 = vand.u32 2147483647, %v4530_v39 }
 0x36e   : > { %v1469_v23 = vmul.f32 1.442695, %v1440_v57  ;;  %v3566_v25 = vpop.eup %3565  ;;  %3577 = vlog2.f32 %v1565_v52  ;;  %v1574_v42 = vadd.f32 1.0, %v4624_v5  ;;  %v1623_v43 = vadd.f32 %v1519_v26, %v1367_v24 }
 0x36f   : > { %1721 = vrot.lane.b32.xlu1 %v1678_v31, %s3969_s23  ;;  %v3568_v30 = vpop.eup %3567  ;;  %3579 = vpow2.f32 %v1473_v62  ;;  %v1531_v35 = vmul.f32 0.6931472, %v3566_v25  ;;  %v1542_v51 = vadd.f32 1.0, %v1541_v14  ;;  %v1550_v46 = vmul.f32 -0.5, %v4604_v63 }
 0x370   : > { %3581 = vpow2.f32 %v1469_v23  ;;  %v1522_v47 = vmul.f32 0.6931472, %v3568_v30  ;;  %v1544_v36 = vand.u32 2147483647, %v4573_v20  ;;  %v1568_v54 = vmul.f32 -0.5, %v4617_v60 }
 0x371   : > { %v1537_v44 = vsel %vm1536_vm14, %v1534_v22, %v1531_v35  ;;  %3583 = vlog2.f32 %v1574_v42  ;;  %v1556_v57 = vadd.f32 1.0, %v4632_v18  ;;  %v1525_v31 = vmul.f32 %v4530_v39, %v1524_v37 }
 0x372   : > { %v1625_v19 = vadd.f32 %v1537_v44, %v1369_v6  ;;  %vm4661_vm1 = vcmp.lt.f32.partialorder %v1526_v55, 0.0004427343  ;;  %v1373_v6 = vmax.f32 %v4475_v40, 0.0  ;;  %v1639_v8 = vsel %vm1383_vm13, %v4450_v12, %v1623_v43 }
 0x373   : > { %1725 = vrot.lane.b32.xlu1 %v1680_v16, %s3969_s23  ;;  %v1543_v10 = vmul.f32 %v4573_v20, %v1542_v51  ;;  %3585 = vlog2.f32 %v1556_v57  ;;  %v1528_v16 = vsel %vm4661_vm1, %v1525_v31, %v1522_v47  ;;  %v1551_v23 = vadd.f32 1.0, %v1550_v46 }
 0x374   : > { %v1641_v62 = vsel %vm1385_vm11, %v4446_v9, %v1625_v19  ;;  %v1553_v24 = vand.u32 2147483647, %v4604_v63  ;;  %vm1545_vm2 = vcmp.lt.f32.partialorder %v1544_v36, 0.0004427343  ;;  %v1569_v14 = vadd.f32 1.0, %v1568_v54 }
 0x375   : > { %v4677_v39 = vsel %vm4526_vm6, %v1641_v62, %v4446_v9  ;;  %v1577_v9 = vmul.f32 -0.5, %v4624_v5  ;;  %v4692_v25 = vsel %vm4526_vm6, %v1639_v8, %v4450_v12  ;;  %v1571_v35 = vand.u32 2147483647, %v4617_v60 }
 0x376   : > { %1791 = vrot.lane.b32.xlu0 %v4677_v39, %s3969_s23  ;;  %v1624_v22 = vadd.f32 %v1528_v16, %v1368_v34  ;;  %v1559_v55 = vmul.f32 -0.5, %v4632_v18  ;;  %v1552_v42 = vmul.f32 %v4604_v63, %v1551_v23  ;;  %vm4699_vm3 = vcmp.lt.f32.partialorder %v1553_v24, 0.0004427343 }
 0x377   : > { %v4656_v61 = vpop.eup %3569  ;;  %v1570_v34 = vmul.f32 %v4617_v60, %v1569_v14  ;;  %v1578_v51 = vadd.f32 1.0, %v1577_v9  ;;  %v1580_v63 = vand.u32 2147483647, %v4624_v5  ;;  %v1371_v54 = vmax.f32 %v4481_v45, 0.0 }
 0x378   : > { %v3572_v49 = vpop.eup %3571  ;;  %v1601_v20 = vadd.f32 1.0, %v4656_v61  ;;  %v1640_v60 = vsel %vm1384_vm0, %v4459_v21, %v1624_v22  ;;  %vm1572_vm5 = vcmp.lt.f32.partialorder %v1571_v35, 0.0004427343  ;;  %v1560_v57 = vadd.f32 1.0, %v1559_v55 }
 0x379   : > { %v4680_v13 = vpop.eup %3573  ;;  %v1540_v52 = vmul.f32 0.6931472, %v3572_v49  ;;  %v1374_v53 = vmax.f32 %v4493_v58, 0.0  ;;  %v1604_v62 = vmul.f32 -0.5, %v4656_v61  ;;  %vm4734_vm8 = vcmp.lt.f32.partialorder %v1580_v63, 0.0004427343 }
 0x37a   : > { %v3576_v56 = vpop.eup %3575  ;;  %3587 = vlog2.f32 %v1601_v20  ;;  %1787 = vrot.lane.b32.xlu0 %v4692_v25, %s3969_s23  ;;  %v1583_v12 = vadd.f32 1.0, %v4680_v13  ;;  %v4742_v23 = vsel %vm4526_vm6, %v1640_v60, %v4459_v21  ;;  %v1562_v14 = vand.u32 2147483647, %v4632_v18 }
 0x37b   : > { %v1546_v26 = vsel %vm1545_vm2, %v1543_v10, %v1540_v52  ;;  %v1549_v30 = vmul.f32 0.6931472, %v3576_v56  ;;  %v3578_v44 = vpop.eup %3577  ;;  %v1579_v56 = vmul.f32 %v4624_v5, %v1578_v51  ;;  %v1561_v9 = vmul.f32 %v4632_v18, %v1560_v57 }
 0x37c   : > { %v1626_v37 = vadd.f32 %v1546_v26, %v1370_v27  ;;  %v4712_v47 = vpop.eup %3579  ;;  %v1567_v36 = vmul.f32 0.6931472, %v3578_v44  ;;  %3589 = vlog2.f32 %v1583_v12  ;;  %v1682_v26 = vld [vmem:[%s4290_s20 + $0x78] sm:$0xff]  ;;  %v1605_v35 = vadd.f32 1.0, %v1604_v62 }
 0x37d   : > { %v1555_v46 = vsel %vm4699_vm3, %v1552_v42, %v1549_v30  ;;  %v4728_v31 = vpop.eup %3581  ;;  %v1610_v52 = vadd.f32 1.0, %v4712_v47  ;;  %v1586_v22 = vmul.f32 -0.5, %v4680_v13  ;;  %vm1390_vm9 = vcmp.ne.f32.partialorder %v4493_v58, %v4493_v58 }
 0x37e   : > { %v1642_v27 = vsel %vm1386_vm15, %v4456_v17, %v1626_v37  ;;  %v3584_v49 = vpop.eup %3583  ;;  %v1627_v8 = vadd.f32 %v1555_v46, %v1371_v54  ;;  %v1592_v20 = vadd.f32 1.0, %v4728_v31  ;;  %vm1563_vm10 = vcmp.lt.f32.partialorder %v1562_v14, 0.0004427343 }
 0x37f   : > { %v4717_v19 = vsel %vm4526_vm6, %v1642_v27, %v4456_v17  ;;  %v1573_v17 = vsel %vm1572_vm5, %v1570_v34, %v1567_v36  ;;  %v1576_v24 = vmul.f32 0.6931472, %v3584_v49  ;;  %3591 = vlog2.f32 %v1610_v52 }
 0x380   : > { %1793 = vrot.lane.b32.xlu1 %v4717_v19, %s3969_s23  ;;  %v1629_v10 = vadd.f32 %v1573_v17, %v1373_v6  ;;  %v3586_v21 = vpop.eup %3585  ;;  %v1643_v18 = vsel %vm1387_vm7, %v4481_v45, %v1627_v8  ;;  %3593 = vlog2.f32 %v1592_v20  ;;  %v1607_v42 = vand.u32 2147483647, %v4656_v61 }
 0x381   : > { %v1582_v30 = vsel %vm4734_vm8, %v1579_v56, %v1576_v24  ;;  %v1558_v55 = vmul.f32 0.6931472, %v3586_v21  ;;  %v4778_v27 = vsel %vm4526_vm6, %v1643_v18, %v4481_v45  ;;  %v1587_v63 = vadd.f32 1.0, %v1586_v22 }
 0x382   : > { %v1645_v6 = vsel %vm1389_vm4, %v4475_v40, %v1629_v10  ;;  %v1630_v37 = vadd.f32 %v1582_v30, %v1374_v53  ;;  %v1606_v36 = vmul.f32 %v4656_v61, %v1605_v35  ;;  %v1589_v60 = vand.u32 2147483647, %v4680_v13 }
 0x383   : > { %v4758_v5 = vsel %vm4526_vm6, %v1645_v6, %v4475_v40  ;;  %v1372_v40 = vmax.f32 %v4509_v11, 0.0  ;;  %v1564_v12 = vsel %vm1563_vm10, %v1561_v9, %v1558_v55  ;;  %v1613_v54 = vmul.f32 -0.5, %v4712_v47 }
 0x384   : > { %1789 = vrot.lane.b32.xlu1 %v4742_v23, %s3969_s23  ;;  %1799 = vrot.lane.b32.xlu0 %v4758_v5, %s3969_s23  ;;  %v1646_v43 = vsel %vm1390_vm9, %v4493_v58, %v1630_v37  ;;  %vm1388_vm11 = vcmp.ne.f32.partialorder %v4509_v11, %v4509_v11  ;;  %v1377_v45 = vmax.f32 %v4567_v29, 0.0  ;;  %vm1608_vm12 = vcmp.lt.f32.partialorder %v1607_v42, 0.0004427343 }
 0x385   : > { %v4783_v34 = vsel %vm4526_vm6, %v1646_v43, %v4493_v58  ;;  %v1628_v51 = vadd.f32 %v1564_v12, %v1372_v40  ;;  %v1595_v53 = vmul.f32 -0.5, %v4728_v31  ;;  %v1588_v49 = vmul.f32 %v4680_v13, %v1587_v63  ;;  %v3496_v63 = vld [vmem:[#allocation11 + $0x64] ss:$8 sps:$4 sm:$0xff]  }
 0x386   : > { %vm1393_vm13 = vcmp.ne.f32.partialorder %v4567_v29, %v4567_v29  ;;  %v1375_v8 = vmax.f32 %v4580_v59, 0.0  ;;  %vm1590_vm14 = vcmp.lt.f32.partialorder %v1589_v60, 0.0004427343  ;;  %v1614_v10 = vadd.f32 1.0, %v1613_v54  ;;  %v3497_v54 = vld [vmem:[#allocation11 + $0x50] ss:$8 sps:$4 sm:$0xff]  }
 0x387   : > { %v3588_v44 = vpop.eup %3587  ;;  %v1644_v57 = vsel %vm1388_vm11, %v4509_v11, %v1628_v51  ;;  %v1616_v56 = vand.u32 2147483647, %v4712_v47  ;;  %v1596_v6 = vadd.f32 1.0, %v1595_v53  ;;  %vm1391_vm15 = vcmp.ne.f32.partialorder %v4580_v59, %v4580_v59  ;;  %v3491_v51 = vld [vmem:[#allocation11 + $0x70] ss:$8 sps:$4 sm:$0xff]  }
 0x388   : > { %1729 = vrot.lane.b32.xlu1 %v1682_v26, %s3969_s23  ;;  %1795 = vrot.lane.b32.xlu0 %v4778_v27, %s3969_s23  ;;  %v1603_v46 = vmul.f32 0.6931472, %v3588_v44  ;;  %v4804_v16 = vsel %vm4526_vm6, %v1644_v57, %v4509_v11  ;;  %v1598_v11 = vand.u32 2147483647, %v4728_v31  ;;  %v1615_v26 = vmul.f32 %v4712_v47, %v1614_v10  ;;  %v1700_v44 = vpop.permute.xlu0 %1699 }
 0x389   : > { %v3590_v58 = vpop.eup %3589  ;;  %vm1617_vm0 = vcmp.lt.f32.partialorder %v1616_v56, 0.0004427343  ;;  %v1597_v37 = vmul.f32 %v4728_v31, %v1596_v6  ;;  %v1376_v40 = vmax.f32 %v4601_v38, 0.0  ;;  %vm1394_vm2 = vcmp.ne.f32.partialorder %v4594_v32, %v4594_v32  ;;  %v3502_v56 = vld [vmem:[#allocation11 + $0x44] ss:$8 sps:$4 sm:$0xff]  }
 0x38a   : > { %v1609_v17 = vsel %vm1608_vm12, %v1606_v36, %v1603_v46  ;;  %v1585_v62 = vmul.f32 0.6931472, %v3590_v58  ;;  %vm1599_vm1 = vcmp.lt.f32.partialorder %v1598_v11, 0.0004427343  ;;  %vm1392_vm3 = vcmp.ne.f32.partialorder %v4601_v38, %v4601_v38  ;;  %v3494_v46 = vld [vmem:[#allocation11 + $0x60] ss:$8 sps:$4 sm:$0xff]  }
 0x38b   : > { %v1633_v61 = vadd.f32 %v1609_v17, %v1377_v45  ;;  %v3499_v36 = vld [vmem:[#allocation11 + $0x54] ss:$8 sps:$4 sm:$0xff]   ;;  %vm1843_vm4 = vcmp.eq.s32.totalorder %v4469_v33, 4 }
 0x38c   : > { %1801 = vrot.lane.b32.xlu1 %v4783_v34, %s3969_s23  ;;  %v1591_v24 = vsel %vm1590_vm14, %v1588_v49, %v1585_v62  ;;  %v3592_v9 = vpop.eup %3591  ;;  %v1702_v60 = vpop.permute.xlu0 %1701 }
 0x38d   : > { %v1649_v52 = vsel %vm1393_vm13, %v4567_v29, %v1633_v61  ;;  %v1631_v14 = vadd.f32 %v1591_v24, %v1375_v8  ;;  %v1612_v21 = vmul.f32 0.6931472, %v3592_v9  ;;  %v3594_v30 = vpop.eup %3593  ;;  %v3500_v24 = vld [vmem:[#allocation11 + $0x40] ss:$8 sps:$4 sm:$0xff]  }
 0x38e   : > { %v4813_v13 = vsel %vm4526_vm6, %v1649_v52, %v4567_v29  ;;  %v1378_v29 = vmax.f32 %v4594_v32, 0.0  ;;  %v1594_v18 = vmul.f32 0.6931472, %v3594_v30 }
 0x38f   : > { %1807 = vrot.lane.b32.xlu0 %v4813_v13, %s3969_s23  ;;  %v1647_v20 = vsel %vm1391_vm15, %v4580_v59, %v1631_v14  ;;  %v1618_v22 = vsel %vm1617_vm0, %v1615_v26, %v1612_v21  ;;  %v1747_v14 = vmul.f32 %v1700_v44, %v4560_v4  ;;  %v3503_v21 = vld [vmem:[#allocation11 + $0x30] ss:$8 sps:$4 sm:$0xff]   ;;  %v3505_v26 = vld [vmem:[#allocation11 + $0x34] ss:$8 sps:$4 sm:$0xff]  }
 0x390   : > { %1797 = vrot.lane.b32.xlu1 %v4804_v16, %s3969_s23  ;;  %v4826_v35 = vsel %vm4526_vm6, %v1647_v20, %v4580_v59  ;;  %v1634_v55 = vadd.f32 %v1618_v22, %v1378_v29  ;;  %v1600_v47 = vsel %vm1599_vm1, %v1597_v37, %v1594_v18  ;;  %v1704_v45 = vpop.permute.xlu0 %1703  ;;  %v1748_v20 = vmul.f32 %v1702_v60, %v4609_v41 }
 0x391   : > { %v1632_v43 = vadd.f32 %v1600_v47, %v1376_v40  ;;  %v1749_v49 = vmul.f32 %v1704_v45, %v4547_v7  ;;  %v3506_v47 = vld [vmem:[#allocation11 + $0x20] ss:$8 sps:$4 sm:$0xff]  }
 0x392   : > { %v1650_v42 = vsel %vm1394_vm2, %v4594_v32, %v1634_v55 }
 0x393   : > { %1803 = vrot.lane.b32.xlu0 %v4826_v35, %s3969_s23  ;;  %v4838_v59 = vsel %vm4526_vm6, %v1650_v42, %v4594_v32  ;;  %v1648_v31 = vsel %vm1392_vm3, %v4601_v38, %v1632_v43  ;;  %v3493_v32 = vld [vmem:[#allocation11 + $0x74] ss:$8 sps:$4 sm:$0xff]   ;;  %v3508_v42 = vld [vmem:[#allocation11 + $0x24] ss:$8 sps:$4 sm:$0xff]  }
 0x394   : > { %1809 = vrot.lane.b32.xlu1 %v4838_v59, %s3969_s23  ;;  %v4848_v12 = vsel %vm4526_vm6, %v1648_v31, %v4601_v38  ;;  %2266 = vmatprep.subr.bf16.mxu1 %v3493_v32  ;;  %v1708_v15 = vpop.permute.xlu0 %1707  ;;  %v1706_v38 = vpop.permute.xlu1 %1705  ;;  %vm1844_vm6 = vcmp.eq.s32.totalorder %v4469_v33, 5  ;;  %v3527_v33 = vld [vmem:[#allocation13 + $0x48] sm:$0xff]  }
 0x395   : > { %2267 = vmatpush1.bf16.msra.mxu1 %v3491_v51  ;;  %v1750_v11 = vmul.f32 %v1706_v38, %v4590_v28  ;;  %v1751_v51 = vmul.f32 %v1708_v15, %v4692_v25  ;;  %v3512_v15 = vld [vmem:[#allocation11] ss:$8 sps:$4 sm:$0xff]   ;;  %v3514_v38 = vld [vmem:[#allocation11 + $0x4] ss:$8 sps:$4 sm:$0xff]  }
 0x396   : > { %2268 = vmatprep.subr.bf16.mxu1 %v3496_v63  ;;  %v3511_v63 = vld [vmem:[#allocation11 + $0x14] ss:$8 sps:$4 sm:$0xff]  }
 0x398   : > { %1805 = vrot.lane.b32.xlu1 %v4848_v12, %s3969_s23  ;;  %v1712_v58 = vpop.permute.xlu0 %1711  ;;  %v4852_v57 = vpop.permute.xlu1 %1709  ;;  %s5163_s23 = scalar_lea.hbm %s5374_s16, %s3109_s25 }
 0x399   : > { %2269 = vmatpush1.bf16.msra.mxu1 %v3494_v46  ;;  %v1753_v40 = vmul.f32 %v1712_v58, %v4677_v39  ;;  %v1752_v45 = vmul.f32 %v4852_v57, %v4742_v23 }
 0x39a   : > { %2270 = vmatprep.subr.bf16.mxu1 %v3499_v36  ;;  %v3509_v36 = vld [vmem:[#allocation11 + $0x10] ss:$8 sps:$4 sm:$0xff]  }
 0x39c   : > { %v4854_v17 = vpop.permute.xlu0 %1715  ;;  %v1714_v53 = vpop.permute.xlu1 %1713 }
 0x39d   : > { %2271 = vmatpush1.bf16.msra.mxu1 %v3497_v54  ;;  %v1754_v54 = vmul.f32 %v1714_v53, %v4717_v19  ;;  %v1755_v57 = vmul.f32 %v4854_v17, %v4778_v27 }
 0x39e   : > { %2272 = vmatprep.subr.bf16.mxu1 %v3502_v56 }
 0x3a0   : > { %v4856_v61 = vpop.permute.xlu0 %1719  ;;  %v4858_v62 = vpop.permute.xlu1 %1717 }
 0x3a1   : > { %2273 = vmatpush1.bf16.msra.mxu1 %v3500_v24 }
 0x3a2   : > { %2274 = vmatprep.subr.bf16.mxu1 %v3505_v26 }
 0x3a5   : > { %2275 = vmatpush1.bf16.msra.mxu1 %v3503_v21 }
 0x3a6   : > { %2276 = vmatprep.subr.bf16.mxu1 %v3508_v42 }
 0x3a9   : > { %2277 = vmatpush1.bf16.msra.mxu1 %v3506_v47 }
 0x3aa   : > { %2278 = vmatprep.subr.bf16.mxu1 %v3511_v63  ;;  %v4924_v63 = vld [vmem:[#allocation13 + $0x20] sm:$0xff]  }
 0x3ad   : > { %2279 = vmatpush1.bf16.msra.mxu1 %v3509_v36  ;;  %v4930_v36 = vld [vmem:[#allocation13 + $0x18] sm:$0xff]  }
 0x3ae   : > { %2280 = vmatprep.subr.bf16.mxu1 %v3514_v38 }
 0x3b1   : > { %2281 = vmatpush1.bf16.msra.mxu1 %v3512_v15 }
 0x3d1   : > { %v1784_v8 = vpop.permute.xlu0 %1783 }
 0x3d2   : > { %v1829_v10 = vadd.f32 %v1784_v8, %v1749_v49  ;;  %v1757_v8 = vmul.f32 %v4856_v61, %v4758_v5 }
 0x3d4   : > { %v1780_v52 = vpop.permute.xlu1 %1779  ;;  %1950 = vperm.xlu0 %3421, %v1829_v10   ;;  %1857 = vperm.xlu1 %3420, %v1829_v10  }
 0x3d5   : > { %v1827_v6 = vadd.f32 %v1780_v52, %v1747_v14  ;;  %v1724_v18 = vpop.permute.xlu0 %1723 }
 0x3d6   : > { %v1759_v17 = vmul.f32 %v1724_v18, %v4826_v35 }
 0x3d8   : > { %3422 = vset.pattern.permute.xlu0 %v3971_v50  ;;  %3423 = vset.pattern.permute.xlu1 %v3970_v48 }
 0x3d9   : > { %v1786_v9 = vpop.permute.xlu1 %1785  ;;  %1942 = vperm.xlu1 %3423, %v1827_v6   ;;  %1847 = vperm.xlu0 %3422, %v1827_v6   ;;  %v4871_v55 = vpop.permute.xlu0 %1727 }
 0x3da   : > { %v1830_v30 = vadd.f32 %v1786_v9, %v1750_v11  ;;  %v1756_v9 = vmul.f32 %v4858_v62, %v4804_v16  ;;  %v1761_v47 = vmul.f32 %v4871_v55, %v4813_v13  ;;  %v3515_v55 = vld [vmem:[#allocation13 + $0x78] sm:$0xff]  }
 0x3db   : > { %3191 = vmatprep.subr.bf16.mxu0 %v3515_v55  ;;  %3287 = vmatprep.subr.bf16.mxu1 %v3515_v55 }
 0x3dd   : > { %v1782_v29 = vpop.permute.xlu1 %1781  ;;  %3424 = vset.pattern.permute.xlu1 %v3971_v50  ;;  %3427 = vset.pattern.permute.xlu0 %v3970_v48 }
 0x3de   : > { %v1828_v22 = vadd.f32 %v1782_v29, %v1748_v20  ;;  %1862 = vperm.xlu1 %3424, %v1830_v30  }
 0x3e0   : > { %1946 = vperm.xlu0 %3427, %v1828_v22  }
 0x3e1   : > { %v4869_v37 = vpop.permute.xlu1 %1721 }
 0x3e2   : > { %3425 = vset.pattern.permute.xlu1 %v3970_v48  ;;  %v1758_v29 = vmul.f32 %v4869_v37, %v4783_v34 }
 0x3e3   : > { %1954 = vperm.xlu1 %3425, %v1830_v30  }
 0x3e5   : > { %v1726_v44 = vpop.permute.xlu1 %1725 }
 0x3e6   : > { %v1760_v62 = vmul.f32 %v1726_v44, %v4848_v12  ;;  %v4909_v44 = vld [vmem:[#allocation13 + $0x70] sm:$0xff]  }
 0x3e7   : > { %3426 = vset.pattern.permute.xlu1 %v3971_v50 }
 0x3e8   : > { %1852 = vperm.xlu1 %3426, %v1828_v22   ;;  %v1792_v43 = vpop.permute.xlu0 %1791 }
 0x3e9   : > { %v1833_v31 = vadd.f32 %v1792_v43, %v1753_v40 }
 0x3eb   : > { %1966 = vperm.xlu0 %3427, %v1833_v31  }
 0x3ec   : > { %1877 = vperm.xlu1 %3426, %v1833_v31   ;;  %v1788_v32 = vpop.permute.xlu0 %1787  ;;  %v4907_v31 = vld [vmem:[#allocation13 + $0x38] sm:$0xff]  }
 0x3ed   : > { %v1831_v46 = vadd.f32 %v1788_v32, %v1751_v51  ;;  %3192 = vmatpush3.bf16.msra.mxu0 %v4907_v31  ;;  %v4912_v51 = vld [vmem:[#allocation13 + $0x30] sm:$0xff]   ;;  %v4918_v32 = vld [vmem:[#allocation13 + $0x28] sm:$0xff]  }
 0x3ee   : > { %3193 = vmatprep.subr.bf16.mxu0 %v4909_v44 }
 0x3ef   : > { %3428 = vset.pattern.permute.xlu0 %v3971_v50 }
 0x3f0   : > { %3429 = vset.pattern.permute.xlu1 %v3970_v48  ;;  %1867 = vperm.xlu0 %3428, %v1831_v46  }
 0x3f1   : > { %1958 = vperm.xlu1 %3429, %v1831_v46   ;;  %3194 = vmatpush3.bf16.msra.mxu0 %v4912_v51  ;;  %v4927_v46 = vld [vmem:[#allocation13 + $0x58] sm:$0xff]  }
 0x3f2   : > { %v1794_v60 = vpop.permute.xlu1 %1793 }
 0x3f3   : > { %v1834_v58 = vadd.f32 %v1794_v60, %v1754_v54 }
 0x3f4   : > { %3433 = vset.pattern.permute.xlu0 %v3970_v48 }
 0x3f5   : > { %3430 = vset.pattern.permute.xlu1 %v3971_v50 }
 0x3f6   : > { %v1790_v49 = vpop.permute.xlu1 %1789  ;;  %v1800_v52 = vpop.permute.xlu0 %1799  ;;  %1882 = vperm.xlu1 %3430, %v1834_v58  }
 0x3f7   : > { %v1832_v10 = vadd.f32 %v1790_v49, %v1752_v45  ;;  %v1837_v53 = vadd.f32 %v1800_v52, %v1757_v8 }
 0x3f9   : > { %1962 = vperm.xlu0 %3433, %v1832_v10  }
 0x3fa   : > { %v1730_v24 = vpop.permute.xlu1 %1729  ;;  %v1796_v56 = vpop.permute.xlu0 %1795  ;;  %3431 = vset.pattern.permute.xlu1 %v3970_v48 }
 0x3fb   : > { %1970 = vperm.xlu1 %3431, %v1834_v58   ;;  %v1835_v61 = vadd.f32 %v1796_v56, %v1755_v57  ;;  %v1762_v37 = vmul.f32 %v1730_v24, %v4838_v59  ;;  %v4959_v24 = vld [vmem:[%s5294_s8 + $0x1] ss:$0 sm:$0xff] }
 0x3fd   : > { %1982 = vperm.xlu0 %3433, %v1837_v53  }
 0x3fe   : > { %v1802_v14 = vpop.permute.xlu1 %1801 }
 0x3ff   : > { %3432 = vset.pattern.permute.xlu1 %v3971_v50  ;;  %v1838_v22 = vadd.f32 %v1802_v14, %v1758_v29 }
 0x400   : > { %1872 = vperm.xlu1 %3432, %v1832_v10  }
 0x401   : > { %3434 = vset.pattern.permute.xlu0 %v3971_v50  ;;  %v1808_v11 = vpop.permute.xlu0 %1807 }
 0x402   : > { %v1798_v6 = vpop.permute.xlu1 %1797  ;;  %1887 = vperm.xlu0 %3434, %v1835_v61   ;;  %v1841_v42 = vadd.f32 %v1808_v11, %v1761_v47 }
 0x403   : > { %v1836_v20 = vadd.f32 %v1798_v6, %v1756_v9 }
 0x404   : > { %1897 = vperm.xlu1 %3432, %v1837_v53  }
 0x405   : > { %v1804_v21 = vpop.permute.xlu0 %1803 }
 0x406   : > { %3438 = vset.pattern.permute.xlu0 %v3970_v48  ;;  %v1839_v26 = vadd.f32 %v1804_v21, %v1759_v17  ;;  %v1810_v30 = vpop.permute.xlu1 %1809 }
 0x407   : > { %1978 = vperm.xlu0 %3438, %v1836_v20   ;;  %v1842_v43 = vadd.f32 %v1810_v30, %v1762_v37 }
 0x408   : > { %3435 = vset.pattern.permute.xlu1 %v3970_v48 }
 0x409   : > { %1974 = vperm.xlu1 %3435, %v1835_v61  }
 0x40a   : > { %v1806_v18 = vpop.permute.xlu1 %1805 }
 0x40b   : > { %3439 = vset.pattern.permute.xlu0 %v3971_v50  ;;  %v1840_v40 = vadd.f32 %v1806_v18, %v1760_v62 }
 0x40c   : > { %1907 = vperm.xlu0 %3439, %v1839_v26  }
 0x40d   : > { %3436 = vset.pattern.permute.xlu1 %v3971_v50 }
 0x40e   : > { %1902 = vperm.xlu1 %3436, %v1838_v22  }
 0x410   : > { %3441 = vset.pattern.permute.xlu0 %v3970_v48 }
 0x411   : > { %1994 = vperm.xlu0 %3441, %v1840_v40  }
 0x412   : > { %1892 = vperm.xlu1 %3436, %v1836_v20  }
 0x415   : > { %1998 = vperm.xlu0 %3441, %v1841_v42  }
 0x416   : > { %3437 = vset.pattern.permute.xlu1 %v3970_v48 }
 0x417   : > { %1986 = vperm.xlu1 %3437, %v1838_v22  }
 0x41b   : > { %1990 = vperm.xlu1 %3437, %v1839_v26  }
 0x41f   : > { %3440 = vset.pattern.permute.xlu1 %v3971_v50  ;;  %v4915_v50 = vld [vmem:[#allocation13 + $0x68] sm:$0xff]  }
 0x420   : > { %1912 = vperm.xlu1 %3440, %v1840_v40   ;;  %3195 = vmatprep.subr.bf16.mxu0 %v4915_v50 }
 0x421   : > { %3196 = vmatpush3.bf16.msra.mxu0 %v4918_v32 }
 0x424   : > { %1917 = vperm.xlu1 %3440, %v1841_v42  }
 0x428   : > { %1922 = vperm.xlu1 %3440, %v1842_v43  }
 0x42c   : > { %3442 = vset.pattern.permute.xlu1 %v3970_v48  ;;  %v4921_v48 = vld [vmem:[#allocation13 + $0x60] sm:$0xff]  }
 0x42d   : > { %2002 = vperm.xlu1 %3442, %v1842_v43   ;;  %3197 = vmatprep.subr.bf16.mxu0 %v4921_v48 }
 0x42e   : > { %3198 = vmatpush3.bf16.msra.mxu0 %v4924_v63 }
 0x42f   : > { %3199 = vmatprep.subr.bf16.mxu0 %v4927_v46 }
 0x432   : > { %3200 = vmatpush3.bf16.msra.mxu0 %v4930_v36 }
 0x44f   : > { %v1951_v60 = vpop.permute.xlu0 %1950  ;;  %v1858_v54 = vpop.permute.xlu1 %1857 }
 0x450   : > { %v1927_v45 = vsel %vm1844_vm6, %v1858_v54, 0.0  ;;  %v2081_v62 = vmul.f32 %v4959_v24, %v1858_v54 }
 0x451   : > { %v2007_v15 = vsel %vm1843_vm4, %v1951_v60, %v1927_v45 }
 0x452   : > { %v2023_v38 = vadd.f32 %v2007_v15, %v4547_v7  ;;  %v4954_v7 = vld [vmem:[%s5294_s8] ss:$0 sm:$0xff] }
 0x453   : > { %v2060_v29 = vmul.f32 %v4954_v7, %v1951_v60 }
 0x454   : > { %2039 = vst [vmem:[%s4942_s13 + $0x10] sm:$0xff] %v2023_v38  ;;  %v1943_v58 = vpop.permute.xlu1 %1942  ;;  %v1848_v49 = vpop.permute.xlu0 %1847 }
 0x455   : > { %v1925_v8 = vsel %vm1844_vm6, %v1848_v49, 0.0  ;;  %v2058_v57 = vmul.f32 %v4954_v7, %v1943_v58  ;;  %v2079_v56 = vmul.f32 %v4959_v24, %v1848_v49  ;;  %v2097_v45 = vadd.f32 %v2081_v62, %v2060_v29 }
 0x456   : > { %v2005_v10 = vsel %vm1843_vm4, %v1943_v58, %v1925_v8 }
 0x457   : > { %v2021_v52 = vadd.f32 %v2005_v10, %v4560_v4  ;;  %v2095_v11 = vadd.f32 %v2079_v56, %v2058_v57 }
 0x459   : > { %2037 = vst [vmem:[%s4942_s13] sm:$0xff] %v2021_v52  ;;  %v1863_v53 = vpop.permute.xlu1 %1862 }
 0x45a   : > { %v1928_v61 = vsel %vm1844_vm6, %v1863_v53, 0.0  ;;  %v2082_v40 = vmul.f32 %v4959_v24, %v1863_v53 }
 0x45b   : > { %v1947_v9 = vpop.permute.xlu0 %1946 }
 0x45c   : > { %v2059_v17 = vmul.f32 %v4954_v7, %v1947_v9 }
 0x45e   : > { %v1955_v4 = vpop.permute.xlu1 %1954 }
 0x45f   : > { %v2008_v14 = vsel %vm1843_vm4, %v1955_v4, %v1928_v61  ;;  %v2061_v21 = vmul.f32 %v4954_v7, %v1955_v4 }
 0x460   : > { %v2024_v6 = vadd.f32 %v2008_v14, %v4590_v28  ;;  %v4978_v28 = vld [vmem:[%s5295_s9] ss:$0 sm:$0xff] }
 0x461   : > { %v2118_v18 = vadd.f32 %v4978_v28, %v2095_v11  ;;  %v2098_v37 = vadd.f32 %v2082_v40, %v2061_v21  ;;  %v2120_v53 = vadd.f32 %v4978_v28, %v2097_v45 }
 0x462   : > { %2040 = vst [vmem:[%s4942_s13 + $0x18] sm:$0xff] %v2024_v6 }
 0x463   : > { %v1853_v20 = vpop.permute.xlu1 %1852  ;;  %v2134_v15 = vmax.f32 %v2118_v18, 0.0  ;;  %v2121_v49 = vadd.f32 %v4978_v28, %v2098_v37  ;;  %v2136_v14 = vmax.f32 %v2120_v53, 0.0 }
 0x464   : > { %v1926_v26 = vsel %vm1844_vm6, %v1853_v20, 0.0  ;;  %v2080_v30 = vmul.f32 %v4959_v24, %v1853_v20 }
 0x465   : > { %v2006_v22 = vsel %vm1843_vm4, %v1947_v9, %v1926_v26  ;;  %v2137_v61 = vmax.f32 %v2121_v49, 0.0 }
 0x466   : > { %v2022_v47 = vadd.f32 %v2006_v22, %v4609_v41  ;;  %v2096_v42 = vadd.f32 %v2080_v30, %v2059_v17  ;;  %v1967_v43 = vpop.permute.xlu0 %1966 }
 0x467   : > { %v1878_v60 = vpop.permute.xlu1 %1877  ;;  %v2151_v6 = vpack.c.bf16 %v2137_v61, %v2136_v14  ;;  %v2064_v40 = vmul.f32 %v4954_v7, %v1967_v43 }
 0x468   : > { %2038 = vst [vmem:[%s4942_s13 + $0x8] sm:$0xff] %v2022_v47  ;;  %v2119_v55 = vadd.f32 %v4978_v28, %v2096_v42  ;;  %v1931_v54 = vsel %vm1844_vm6, %v1878_v60, 0.0 }
 0x469   : > { %v2011_v58 = vsel %vm1843_vm4, %v1967_v43, %v1931_v54 }
 0x46a   : > { %v2135_v38 = vmax.f32 %v2119_v55, 0.0  ;;  %v2027_v41 = vadd.f32 %v2011_v58, %v4677_v39 }
 0x46b   : > { %v1868_v10 = vpop.permute.xlu0 %1867 }
 0x46c   : > { %v2150_v8 = vpack.c.bf16 %v2135_v38, %v2134_v15  ;;  %2043 = vst [vmem:[%s4942_s13 + $0x30] sm:$0xff] %v2027_v41  ;;  %v1959_v52 = vpop.permute.xlu1 %1958  ;;  %v1929_v57 = vsel %vm1844_vm6, %v1868_v10, 0.0 }
 0x46d   : > { %v2009_v56 = vsel %vm1843_vm4, %v1959_v52, %v1929_v57  ;;  %v2062_v9 = vmul.f32 %v4954_v7, %v1959_v52 }
 0x46e   : > { %2299 = vmatmul.mubr.bf16.vlgmr.msra.gmra.mxu1 %v2150_v8  ;;  %v2025_v39 = vadd.f32 %v2009_v56, %v4692_v25 }
 0x46f   : > { %2308 = vmatprep.mubr.bf16.mxu1 %v3968_v0  ;;  %3295 = vmatpush3.bf16.msra.mxu1 %v4907_v31 }
 0x470   : > { %3288 = vmatprep.subr.bf16.mxu1 %v4909_v44  ;;  %2041 = vst [vmem:[%s4942_s13 + $0x20] sm:$0xff] %v2025_v39 }
 0x471   : > { %v1883_v4 = vpop.permute.xlu1 %1882 }
 0x472   : > { %v1932_v31 = vsel %vm1844_vm6, %v1883_v4, 0.0  ;;  %v2086_v62 = vmul.f32 %v4959_v24, %v1883_v4 }
 0x473   : > { %3296 = vmatpush3.bf16.msra.mxu1 %v4912_v51  ;;  %v2083_v51 = vmul.f32 %v4959_v24, %v1868_v10 }
 0x474   : > { %3289 = vmatprep.subr.bf16.mxu1 %v4915_v50  ;;  %v1963_v25 = vpop.permute.xlu0 %1962 }
 0x475   : > { %v2099_v20 = vadd.f32 %v2083_v51, %v2062_v9 }
 0x476   : > { %2309 = vmatmul.mubr.bf16.gmra.mxu1 %v2151_v6  ;;  %v1971_v11 = vpop.permute.xlu1 %1970 }
 0x477   : > { %2318 = vmatprep.mubr.bf16.mxu1 %v3968_v0  ;;  %3297 = vmatpush3.bf16.msra.mxu1 %v4918_v32  ;;  %v2012_v44 = vsel %vm1843_vm4, %v1971_v11, %v1932_v31  ;;  %v2063_v32 = vmul.f32 %v4954_v7, %v1963_v25  ;;  %v2065_v26 = vmul.f32 %v4954_v7, %v1971_v11 }
 0x478   : > { %3290 = vmatprep.subr.bf16.mxu1 %v4921_v48  ;;  %v2028_v50 = vadd.f32 %v2012_v44, %v4717_v19  ;;  %v1983_v17 = vpop.permute.xlu0 %1982  ;;  %v2085_v19 = vmul.f32 %v4959_v24, %v1878_v60 }
 0x479   : > { %v2102_v47 = vadd.f32 %v2086_v62, %v2065_v26  ;;  %v2068_v51 = vmul.f32 %v4954_v7, %v1983_v17 }
 0x47a   : > { %2044 = vst [vmem:[%s4942_s13 + $0x38] sm:$0xff] %v2028_v50 }
 0x47b   : > { %3298 = vmatpush3.bf16.msra.mxu1 %v4924_v63  ;;  %v1873_v21 = vpop.permute.xlu1 %1872  ;;  %v2122_v63 = vadd.f32 %v4978_v28, %v2099_v20  ;;  %v2125_v15 = vadd.f32 %v4978_v28, %v2102_v47 }
 0x47c   : > { %3291 = vmatprep.subr.bf16.mxu1 %v4927_v46  ;;  %v1930_v48 = vsel %vm1844_vm6, %v1873_v21, 0.0  ;;  %v2084_v30 = vmul.f32 %v4959_v24, %v1873_v21 }
 0x47d   : > { %v2010_v29 = vsel %vm1843_vm4, %v1963_v25, %v1930_v48  ;;  %v1888_v55 = vpop.permute.xlu0 %1887  ;;  %v2138_v45 = vmax.f32 %v2122_v63, 0.0  ;;  %v2141_v10 = vmax.f32 %v2125_v15, 0.0 }
 0x47e   : > { %v2026_v46 = vadd.f32 %v2010_v29, %v4742_v23  ;;  %v2100_v22 = vadd.f32 %v2084_v30, %v2063_v32  ;;  %v2101_v23 = vadd.f32 %v2085_v19, %v2064_v40  ;;  %v1933_v43 = vsel %vm1844_vm6, %v1888_v55, 0.0 }
 0x47f   : > { %3299 = vmatpush3.bf16.msra.mxu1 %v4930_v36  ;;  %v1898_v18 = vpop.permute.xlu1 %1897  ;;  %v2087_v53 = vmul.f32 %v4959_v24, %v1888_v55 }
 0x480   : > { %2042 = vst [vmem:[%s4942_s13 + $0x28] sm:$0xff] %v2026_v46  ;;  %v2123_v42 = vadd.f32 %v4978_v28, %v2100_v22  ;;  %v1935_v37 = vsel %vm1844_vm6, %v1898_v18, 0.0  ;;  %v2124_v49 = vadd.f32 %v4978_v28, %v2101_v23  ;;  %v2089_v9 = vmul.f32 %v4959_v24, %v1898_v18 }
 0x481   : > { %v2015_v60 = vsel %vm1843_vm4, %v1983_v17, %v1935_v37 }
 0x482   : > { %v2031_v54 = vadd.f32 %v2015_v60, %v4758_v5  ;;  %v2139_v36 = vmax.f32 %v2123_v42, 0.0  ;;  %v2140_v57 = vmax.f32 %v2124_v49, 0.0  ;;  %v1979_v56 = vpop.permute.xlu0 %1978  ;;  %v2105_v32 = vadd.f32 %v2089_v9, %v2068_v51 }
 0x483   : > { %v2067_v14 = vmul.f32 %v4954_v7, %v1979_v56 }
 0x484   : > { %2047 = vst [vmem:[%s4942_s13 + $0x50] sm:$0xff] %v2031_v54  ;;  %v1975_v38 = vpop.permute.xlu1 %1974  ;;  %v2152_v58 = vpack.c.bf16 %v2139_v36, %v2138_v45  ;;  %v2153_v61 = vpack.c.bf16 %v2141_v10, %v2140_v57  ;;  %v2128_v18 = vadd.f32 %v4978_v28, %v2105_v32 }
 0x485   : > { %v2013_v41 = vsel %vm1843_vm4, %v1975_v38, %v1933_v43  ;;  %v2066_v5 = vmul.f32 %v4954_v7, %v1975_v38 }
 0x486   : > { %v2029_v8 = vadd.f32 %v2013_v41, %v4778_v27  ;;  %2319 = vmatmul.mubr.bf16.gmra.mxu1 %v2152_v58  ;;  %v2144_v54 = vmax.f32 %v2128_v18, 0.0 }
 0x487   : > { %2328 = vmatprep.mubr.bf16.mxu1 %v3968_v0  ;;  %v2103_v39 = vadd.f32 %v2087_v53, %v2066_v5  ;;  %v1908_v26 = vpop.permute.xlu0 %1907 }
 0x488   : > { %2045 = vst [vmem:[%s4942_s13 + $0x40] sm:$0xff] %v2029_v8  ;;  %v1937_v62 = vsel %vm1844_vm6, %v1908_v26, 0.0  ;;  %v2091_v55 = vmul.f32 %v4959_v24, %v1908_v26  ;;  %v3525_v26 = vld [vmem:[#allocation13 + $0x50] sm:$0xff]  }
 0x489   : > { %v1903_v52 = vpop.permute.xlu1 %1902  ;;  %v2126_v11 = vadd.f32 %v4978_v28, %v2103_v39  ;;  %3201 = vmatprep.subr.bf16.mxu0 %v3525_v26  ;;  %3292 = vmatprep.subr.bf16.mxu1 %v3525_v26 }
 0x48a   : > { %v1936_v50 = vsel %vm1844_vm6, %v1903_v52, 0.0  ;;  %v2090_v48 = vmul.f32 %v4959_v24, %v1903_v52 }
 0x48b   : > { %v2142_v29 = vmax.f32 %v2126_v11, 0.0 }
 0x48c   : > { %v1995_v37 = vpop.permute.xlu0 %1994 }
 0x48d   : > { %v1893_v4 = vpop.permute.xlu1 %1892  ;;  %v2071_v45 = vmul.f32 %v4954_v7, %v1995_v37 }
 0x48e   : > { %v1934_v27 = vsel %vm1844_vm6, %v1893_v4, 0.0  ;;  %v2088_v6 = vmul.f32 %v4959_v24, %v1893_v4  ;;  %2329 = vmatmul.mubr.bf16.gmra.mxu1 %v2153_v61 }
 0x48f   : > { %v2014_v31 = vsel %vm1843_vm4, %v1979_v56, %v1934_v27  ;;  %2338 = vmatprep.mubr.bf16.mxu1 %v3968_v0 }
 0x490   : > { %v2030_v25 = vadd.f32 %v2014_v31, %v4804_v16  ;;  %v2104_v44 = vadd.f32 %v2088_v6, %v2067_v14  ;;  %v1999_v8 = vpop.permute.xlu0 %1998 }
 0x491   : > { %v2072_v4 = vmul.f32 %v4954_v7, %v1999_v8 }
 0x492   : > { %2046 = vst [vmem:[%s4942_s13 + $0x48] sm:$0xff] %v2030_v25  ;;  %v2127_v20 = vadd.f32 %v4978_v28, %v2104_v44  ;;  %v1987_v21 = vpop.permute.xlu1 %1986 }
 0x493   : > { %v2016_v30 = vsel %vm1843_vm4, %v1987_v21, %v1936_v50  ;;  %v2069_v16 = vmul.f32 %v4954_v7, %v1987_v21 }
 0x494   : > { %v2032_v19 = vadd.f32 %v2016_v30, %v4783_v34  ;;  %v2143_v17 = vmax.f32 %v2127_v20, 0.0 }
 0x495   : > { %v2106_v63 = vadd.f32 %v2090_v48, %v2069_v16 }
 0x496   : > { %2048 = vst [vmem:[%s4942_s13 + $0x58] sm:$0xff] %v2032_v19  ;;  %v1991_v46 = vpop.permute.xlu1 %1990  ;;  %v2154_v22 = vpack.c.bf16 %v2143_v17, %v2142_v29 }
 0x497   : > { %v2129_v40 = vadd.f32 %v4978_v28, %v2106_v63  ;;  %v2017_v47 = vsel %vm1843_vm4, %v1991_v46, %v1937_v62  ;;  %v2070_v34 = vmul.f32 %v4954_v7, %v1991_v46 }
 0x498   : > { %v2033_v42 = vadd.f32 %v2017_v47, %v4826_v35  ;;  %2339 = vmatmul.mubr.bf16.gmra.mxu1 %v2154_v22 }
 0x499   : > { %2348 = vmatprep.mubr.bf16.mxu1 %v3968_v0  ;;  %v2145_v60 = vmax.f32 %v2129_v40, 0.0  ;;  %v2107_v36 = vadd.f32 %v2091_v55, %v2070_v34 }
 0x49a   : > { %2049 = vst [vmem:[%s4942_s13 + $0x60] sm:$0xff] %v2033_v42 }
 0x49b   : > { %v1913_v23 = vpop.permute.xlu1 %1912  ;;  %v2155_v41 = vpack.c.bf16 %v2145_v60, %v2144_v54  ;;  %v2130_v5 = vadd.f32 %v4978_v28, %v2107_v36 }
 0x49c   : > { %v1938_v43 = vsel %vm1844_vm6, %v1913_v23, 0.0  ;;  %v2092_v35 = vmul.f32 %v4959_v24, %v1913_v23 }
 0x49d   : > { %v2018_v15 = vsel %vm1843_vm4, %v1995_v37, %v1938_v43  ;;  %v2146_v61 = vmax.f32 %v2130_v5, 0.0 }
 0x49e   : > { %v2034_v38 = vadd.f32 %v2018_v15, %v4848_v12  ;;  %v2108_v58 = vadd.f32 %v2092_v35, %v2071_v45 }
 0x49f   : > { %v1918_v49 = vpop.permute.xlu1 %1917 }
 0x4a0   : > { %2050 = vst [vmem:[%s4942_s13 + $0x68] sm:$0xff] %v2034_v38  ;;  %v2131_v10 = vadd.f32 %v4978_v28, %v2108_v58  ;;  %v1939_v52 = vsel %vm1844_vm6, %v1918_v49, 0.0  ;;  %2349 = vmatmul.mubr.bf16.gmra.mxu1 %v2155_v41  ;;  %v2093_v56 = vmul.f32 %v4959_v24, %v1918_v49 }
 0x4a1   : > { %v2019_v53 = vsel %vm1843_vm4, %v1999_v8, %v1939_v52  ;;  %2358 = vmatprep.mubr.bf16.mxu1 %v3968_v0 }
 0x4a2   : > { %v2035_v12 = vadd.f32 %v2019_v53, %v4813_v13  ;;  %v2147_v57 = vmax.f32 %v2131_v10, 0.0  ;;  %v2109_v27 = vadd.f32 %v2093_v56, %v2072_v4 }
 0x4a3   : > { %v1923_v39 = vpop.permute.xlu1 %1922 }
 0x4a4   : > { %2051 = vst [vmem:[%s4942_s13 + $0x70] sm:$0xff] %v2035_v12  ;;  %v2156_v14 = vpack.c.bf16 %v2147_v57, %v2146_v61  ;;  %v1940_v6 = vsel %vm1844_vm6, %v1923_v39, 0.0  ;;  %v2094_v31 = vmul.f32 %v4959_v24, %v1923_v39  ;;  %v2132_v44 = vadd.f32 %v4978_v28, %v2109_v27  ;;  %v3526_v24 = vld [vmem:[#allocation13 + $0x10] sm:$0xff]  }
 0x4a5   : > { %3202 = vmatpush3.bf16.msra.mxu0 %v3526_v24  ;;  %3300 = vmatpush3.bf16.msra.mxu1 %v3526_v24 }
 0x4a6   : > { %v2148_v21 = vmax.f32 %v2132_v44, 0.0  ;;  %3203 = vmatprep.subr.bf16.mxu0 %v3527_v33  ;;  %3293 = vmatprep.subr.bf16.mxu1 %v3527_v33 }
 0x4a8   : > { %v2003_v9 = vpop.permute.xlu1 %2002  ;;  %2359 = vmatmul.mubr.bf16.gmra.mxu1 %v2156_v14 }
 0x4a9   : > { %v2020_v13 = vsel %vm1843_vm4, %v2003_v9, %v1940_v6  ;;  %v2073_v11 = vmul.f32 %v4954_v7, %v2003_v9  ;;  %2368 = vmatprep.mubr.bf16.mxu1 %v3968_v0  ;;  %v3528_v0 = vld [vmem:[#allocation13 + $0x8] sm:$0xff]   ;;  %v3530_v7 = vld [vmem:[#allocation13] sm:$0xff]  }
 0x4aa   : > { %v2036_v25 = vadd.f32 %v2020_v13, %v4838_v59  ;;  %v3529_v59 = vld [vmem:[#allocation13 + $0x40] sm:$0xff]   ;;  %3204 = vmatpush3.bf16.msra.mxu0 %v3528_v0  ;;  %3301 = vmatpush3.bf16.msra.mxu1 %v3528_v0 }
 0x4ab   : > { %v2110_v51 = vadd.f32 %v2094_v31, %v2073_v11  ;;  %3205 = vmatprep.subr.bf16.mxu0 %v3529_v59  ;;  %3294 = vmatprep.subr.bf16.mxu1 %v3529_v59 }
 0x4ac   : > { %2052 = vst [vmem:[%s4942_s13 + $0x78] sm:$0xff] %v2036_v25 }
 0x4ad   : > { %v2133_v50 = vadd.f32 %v4978_v28, %v2110_v51  ;;  %v2174_v28 = vld [vmem:[%s5297_s11] sm:$0x3] }
 0x4ae   : > { %3206 = vmatpush3.bf16.msra.mxu0 %v3530_v7  ;;  %3302 = vmatpush3.bf16.msra.mxu1 %v3530_v7  ;;  %v5119_v30 = vrot.slane %v2174_v28, %v689_v2  ;;  %v5123_v16 = vrot.slane %v2174_v28, %v685_v3 }
 0x4af   : > { %v2149_v20 = vmax.f32 %v2133_v50, 0.0 }
 0x4b1   : > { %v2157_v32 = vpack.c.bf16 %v2149_v20, %v2148_v21 }
 0x4b3   : > { %2369 = vmatmul.mubr.bf16.gmra.mxu1 %v2157_v32 }
 0x52e   : > { %v2300_v48 = vpop.f32.mrf.mxu1 }
 0x52f   : > { %v2301_v62 = vadd.f32 %v2300_v48, %v5123_v16 }
 0x530   : > { %v2302_v19 = vpop.f32.mrf.mxu1 }
 0x531   : > { %v2303_v17 = vadd.f32 %v2302_v19, %v5119_v30  ;;  %v2379_v42 = vmax.f32 %v2301_v62, 0.0 }
 0x532   : > { %v2304_v29 = vpop.f32.mrf.mxu1 }
 0x533   : > { %v2305_v63 = vadd.f32 %v2304_v29, %v5123_v16  ;;  %v2380_v47 = vmax.f32 %v2303_v17, 0.0 }
 0x534   : > { %v2306_v46 = vpop.f32.mrf.mxu1 }
 0x535   : > { %v2307_v22 = vadd.f32 %v2306_v46, %v5119_v30  ;;  %v2381_v18 = vmax.f32 %v2305_v63, 0.0 }
 0x536   : > { %v2310_v40 = vpop.f32.mrf.mxu1 }
 0x537   : > { %v2382_v2 = vmax.f32 %v2307_v22, 0.0  ;;  %v2411_v3 = vpack.c.bf16 %v2381_v18, %v2379_v42  ;;  %v2311_v23 = vadd.f32 %v2310_v40, %v5123_v16 }
 0x538   : > { %v2312_v34 = vpop.f32.mrf.mxu1 }
 0x539   : > { %v2412_v1 = vpack.c.bf16 %v2382_v2, %v2380_v47  ;;  %v2313_v55 = vadd.f32 %v2312_v34, %v5119_v30  ;;  %v2383_v15 = vmax.f32 %v2311_v23, 0.0 }
 0x53a   : > { %v2314_v37 = vpop.f32.mrf.mxu1 }
 0x53b   : > { %v2315_v60 = vadd.f32 %v2314_v37, %v5123_v16  ;;  %2594 = vmatprep.mubr.bf16.mxu0 %v2412_v1  ;;  %v2384_v43 = vmax.f32 %v2313_v55, 0.0 }
 0x53c   : > { %v2316_v54 = vpop.f32.mrf.mxu1  ;;  %2595 = vmatmul.mubr.bf16.vlgmr.msra.gmra.mxu0 %v2411_v3 }
 0x53d   : > { %v2317_v45 = vadd.f32 %v2316_v54, %v5119_v30  ;;  %v2385_v36 = vmax.f32 %v2315_v60, 0.0 }
 0x53f   : > { %v2386_v35 = vmax.f32 %v2317_v45, 0.0  ;;  %v2413_v58 = vpack.c.bf16 %v2385_v36, %v2383_v15 }
 0x541   : > { %v2414_v38 = vpack.c.bf16 %v2386_v35, %v2384_v43 }
 0x543   : > { %2602 = vmatprep.mubr.bf16.mxu0 %v2414_v38 }
 0x544   : > { %2603 = vmatmul.mubr.bf16.gmra.mxu0 %v2413_v58 }
 0x546   : > { %v2320_v41 = vpop.f32.mrf.mxu1 }
 0x547   : > { %v2321_v52 = vadd.f32 %v2320_v41, %v5123_v16 }
 0x548   : > { %v2322_v49 = vpop.f32.mrf.mxu1 }
 0x549   : > { %v2323_v5 = vadd.f32 %v2322_v49, %v5119_v30  ;;  %v2387_v4 = vmax.f32 %v2321_v52, 0.0 }
 0x54a   : > { %v2324_v8 = vpop.f32.mrf.mxu1 }
 0x54b   : > { %v2325_v10 = vadd.f32 %v2324_v8, %v5123_v16  ;;  %v2388_v39 = vmax.f32 %v2323_v5, 0.0 }
 0x54c   : > { %v2326_v53 = vpop.f32.mrf.mxu1 }
 0x54d   : > { %v2327_v12 = vadd.f32 %v2326_v53, %v5119_v30  ;;  %v2389_v57 = vmax.f32 %v2325_v10, 0.0 }
 0x54e   : > { %v2330_v56 = vpop.f32.mrf.mxu1 }
 0x54f   : > { %v2390_v61 = vmax.f32 %v2327_v12, 0.0  ;;  %v2415_v6 = vpack.c.bf16 %v2389_v57, %v2387_v4  ;;  %v2331_v11 = vadd.f32 %v2330_v56, %v5123_v16 }
 0x550   : > { %v2332_v14 = vpop.f32.mrf.mxu1 }
 0x551   : > { %v2416_v27 = vpack.c.bf16 %v2390_v61, %v2388_v39  ;;  %v2333_v31 = vadd.f32 %v2332_v14, %v5119_v30  ;;  %v2391_v21 = vmax.f32 %v2331_v11, 0.0 }
 0x552   : > { %v2334_v9 = vpop.f32.mrf.mxu1 }
 0x553   : > { %v2335_v13 = vadd.f32 %v2334_v9, %v5123_v16  ;;  %2610 = vmatprep.mubr.bf16.mxu0 %v2416_v27  ;;  %v2392_v50 = vmax.f32 %v2333_v31, 0.0 }
 0x554   : > { %v2336_v25 = vpop.f32.mrf.mxu1  ;;  %2611 = vmatmul.mubr.bf16.gmra.mxu0 %v2415_v6 }
 0x555   : > { %v2337_v44 = vadd.f32 %v2336_v25, %v5119_v30  ;;  %v2393_v51 = vmax.f32 %v2335_v13, 0.0 }
 0x557   : > { %v2394_v20 = vmax.f32 %v2337_v44, 0.0  ;;  %v2417_v24 = vpack.c.bf16 %v2393_v51, %v2391_v21 }
 0x558   : > { %v2340_v32 = vpop.f32.mrf.mxu1 }
 0x559   : > { %v2418_v26 = vpack.c.bf16 %v2394_v20, %v2392_v50  ;;  %v2341_v28 = vadd.f32 %v2340_v32, %v5123_v16 }
 0x55a   : > { %v2342_v33 = vpop.f32.mrf.mxu1 }
 0x55b   : > { %2618 = vmatprep.mubr.bf16.mxu0 %v2418_v26  ;;  %v2343_v59 = vadd.f32 %v2342_v33, %v5119_v30  ;;  %v2395_v46 = vmax.f32 %v2341_v28, 0.0 }
 0x55c   : > { %v2344_v0 = vpop.f32.mrf.mxu1  ;;  %2619 = vmatmul.mubr.bf16.gmra.mxu0 %v2417_v24 }
 0x55d   : > { %v2345_v7 = vadd.f32 %v2344_v0, %v5123_v16  ;;  %v2396_v63 = vmax.f32 %v2343_v59, 0.0 }
 0x55e   : > { %v2346_v48 = vpop.f32.mrf.mxu1 }
 0x55f   : > { %v2347_v19 = vadd.f32 %v2346_v48, %v5119_v30  ;;  %v2397_v29 = vmax.f32 %v2345_v7, 0.0 }
 0x560   : > { %v2350_v17 = vpop.f32.mrf.mxu1 }
 0x561   : > { %v2398_v62 = vmax.f32 %v2347_v19, 0.0  ;;  %v2419_v40 = vpack.c.bf16 %v2397_v29, %v2395_v46  ;;  %v2351_v34 = vadd.f32 %v2350_v17, %v5123_v16 }
 0x562   : > { %v2352_v22 = vpop.f32.mrf.mxu1 }
 0x563   : > { %v2420_v18 = vpack.c.bf16 %v2398_v62, %v2396_v63  ;;  %v2353_v2 = vadd.f32 %v2352_v22, %v5119_v30  ;;  %v2399_v54 = vmax.f32 %v2351_v34, 0.0 }
 0x564   : > { %v2354_v47 = vpop.f32.mrf.mxu1 }
 0x565   : > { %v2355_v42 = vadd.f32 %v2354_v47, %v5123_v16  ;;  %2626 = vmatprep.mubr.bf16.mxu0 %v2420_v18  ;;  %v2400_v60 = vmax.f32 %v2353_v2, 0.0 }
 0x566   : > { %v2356_v1 = vpop.f32.mrf.mxu1  ;;  %2627 = vmatmul.mubr.bf16.gmra.mxu0 %v2419_v40 }
 0x567   : > { %v2357_v3 = vadd.f32 %v2356_v1, %v5119_v30  ;;  %v2401_v37 = vmax.f32 %v2355_v42, 0.0 }
 0x568   : > { %v2360_v55 = vpop.f32.mrf.mxu1 }
 0x569   : > { %v2402_v23 = vmax.f32 %v2357_v3, 0.0  ;;  %v2421_v43 = vpack.c.bf16 %v2401_v37, %v2399_v54  ;;  %v2361_v58 = vadd.f32 %v2360_v55, %v5123_v16 }
 0x56a   : > { %v2362_v45 = vpop.f32.mrf.mxu1 }
 0x56b   : > { %v2422_v36 = vpack.c.bf16 %v2402_v23, %v2400_v60  ;;  %v2363_v15 = vadd.f32 %v2362_v45, %v5119_v30  ;;  %v2403_v52 = vmax.f32 %v2361_v58, 0.0 }
 0x56c   : > { %v2364_v35 = vpop.f32.mrf.mxu1 }
 0x56d   : > { %v2365_v38 = vadd.f32 %v2364_v35, %v5123_v16  ;;  %2634 = vmatprep.mubr.bf16.mxu0 %v2422_v36  ;;  %v2404_v5 = vmax.f32 %v2363_v15, 0.0 }
 0x56e   : > { %v2366_v41 = vpop.f32.mrf.mxu1  ;;  %2635 = vmatmul.mubr.bf16.gmra.mxu0 %v2421_v43 }
 0x56f   : > { %v2367_v49 = vadd.f32 %v2366_v41, %v5119_v30  ;;  %v2405_v8 = vmax.f32 %v2365_v38, 0.0 }
 0x571   : > { %v2406_v10 = vmax.f32 %v2367_v49, 0.0  ;;  %v2423_v57 = vpack.c.bf16 %v2405_v8, %v2403_v52 }
 0x573   : > { %v2424_v53 = vpack.c.bf16 %v2406_v10, %v2404_v5  ;;  %v2370_v12 = vpop.f32.mrf.mxu1 }
 0x574   : > { %v2371_v14 = vadd.f32 %v2370_v12, %v5123_v16 }
 0x575   : > { %v2372_v56 = vpop.f32.mrf.mxu1  ;;  %2642 = vmatprep.mubr.bf16.mxu1 %v2424_v53 }
 0x576   : > { %2643 = vmatmul.mubr.bf16.vlgmr.msra.gmra.mxu1 %v2423_v57  ;;  %v2373_v61 = vadd.f32 %v2372_v56, %v5119_v30  ;;  %v2407_v11 = vmax.f32 %v2371_v14, 0.0 }
 0x577   : > { %v2374_v39 = vpop.f32.mrf.mxu1 }
 0x578   : > { %v2375_v4 = vadd.f32 %v2374_v39, %v5123_v16  ;;  %v2408_v31 = vmax.f32 %v2373_v61, 0.0 }
 0x579   : > { %v2376_v27 = vpop.f32.mrf.mxu1 }
 0x57a   : > { %v2377_v6 = vadd.f32 %v2376_v27, %v5119_v30  ;;  %v2409_v9 = vmax.f32 %v2375_v4, 0.0 }
 0x57c   : > { %v2410_v13 = vmax.f32 %v2377_v6, 0.0  ;;  %v2425_v44 = vpack.c.bf16 %v2409_v9, %v2407_v11 }
 0x57e   : > { %v2426_v25 = vpack.c.bf16 %v2410_v13, %v2408_v31 }
 0x580   : > { %2650 = vmatprep.mubr.bf16.mxu1 %v2426_v25 }
 0x581   : > { %2651 = vmatmul.mubr.bf16.gmra.mxu1 %v2425_v44 }
 0x582   : > { %3858 = shalt.err (!%p3855_p8)
}
 0x583   : > { %s3859_s13 = scalar_lea.hbm %s5163_s23, 2048  ;;  %s3863_s15 = scalar_lea.hbm %s5374_s16, 4096 }
 0x584   : > { %p3860_p3 = scmp.ne.s32.totalorder %s5163_s23, %s3859_s13  ;;  %p3864_p2 = scmp.lt.s32.totalorder %s5163_s23, %s5374_s16 }
 0x585   : > { %p3865_p10 = scmp.lt.s32.totalorder %s3863_s15, %s3859_s13 }
 0x586   : > { %p3861_p7 = pnand %p3860_p3, %p5375_p5 }
 0x587   : > { %p3866_p0 = por %p3865_p10, %p3864_p2 }
 0x588   : > { %p3862_p12 = pneg %p3861_p7 }
 0x58a   : > { %p3867_p13 = pnand %p3866_p0, %p3862_p12 }
 0x58c   : > { %3870 = shalt.err (!%p3867_p13)
}
 0x58d   : > { %s3973_s12 = smov 128   ;;  %s3974_s20 = smov 8  }
 0x58e   : > { %3327 = dma.vmem_to_hbm [thread:$0]  (%p5375_p5), %s5166_s30, 2048, %s5163_s23, %s2772_s26, %s3973_s12, %s3973_s12, %s3974_s20  }
 0x58f   : > { %s5376_s10 = sld [smem:[#allocation35_spill]]  ;;  %s5207_s23 = scalar_lea.vmem [#allocation15], %s4278_s18 }
 0x590   : > { %s2806_s18 = sshll.u32 %s5207_s23, 4  ;;  %s5377_s2 = sld [smem:[#allocation37_spill]]  ;;  %s5241_s18 = int_to_ptr.vmem [resolvable:$true] %s2806_s18 }
 0x591   : > { %s2777_s13 = scalar_lea.sflag [#allocation16], %s4275_s0  ;;  %s3871_s14 = scalar_lea.vmem %s5241_s18, 2048 }
 0x592   : > { %p3872_p9 = scmp.ne.s32.totalorder %s5241_s18, %s3871_s14  ;;  %s3975_s28 = smov [#allocation15]  }
 0x593   : > { %s3875_s24 = sshll.u32 %s3975_s28, 4  ;;  %s3876_s24 = int_to_ptr.vmem [resolvable:$false] %s3875_s24 }
 0x594   : > { %p3873_p11 = pnand %p3872_p9, %p5375_p5  ;;  %s3877_s15 = scalar_lea.vmem %s3876_s24, 4096 }
 0x595   : > { %v5197_v16 = vld [vmem:[%s5376_s10] ss:$0 sm:$0xff]  ;;  %p3878_p4 = scmp.lt.s32.totalorder %s5241_s18, %s3876_s24  ;;  %p3879_p6 = scmp.lt.s32.totalorder %s3877_s15, %s3871_s14 }
 0x596   : > { %s5239_s22 = scalar_lea.hbm %s5377_s2, %s3109_s25  ;;  %p3874_p1 = pneg %p3873_p11 }
 0x597   : > { %p3880_p8 = por %p3879_p6, %p3878_p4 }
 0x599   : > { %p3881_p3 = pnand %p3880_p8, %p3874_p1 }
 0x5fc   : > { %v3207_v30 = vpop.f32.mrf.mxu0 }
 0x5fe   : > { %v3208_v51 = vpop.f32.mrf.mxu0 }
 0x5ff   : > { %v3209_v50 = vadd.f32 %v3208_v51, %v3207_v30 }
 0x600   : > { %v3210_v20 = vpop.f32.mrf.mxu0 }
 0x601   : > { %v2597_v21 = vadd.f32 %v3209_v50, %v5197_v16 }
 0x602   : > { %v3211_v32 = vpop.f32.mrf.mxu0 }
 0x603   : > { %v3083_v26 = vmul.f32 -1.442695, %v2597_v21  ;;  %v3212_v24 = vadd.f32 %v3211_v32, %v3210_v20 }
 0x604   : > { %v3213_v33 = vpop.f32.mrf.mxu0 }
 0x605   : > { %3595 = vpow2.f32 %v3083_v26  ;;  %v2600_v0 = vadd.f32 %v3212_v24, %v5197_v16 }
 0x606   : > { %v3214_v59 = vpop.f32.mrf.mxu0 }
 0x607   : > { %v3084_v7 = vmul.f32 -1.442695, %v2600_v0  ;;  %v3215_v28 = vadd.f32 %v3214_v59, %v3213_v33 }
 0x608   : > { %v3216_v48 = vpop.f32.mrf.mxu0 }
 0x609   : > { %3597 = vpow2.f32 %v3084_v7  ;;  %v2605_v19 = vadd.f32 %v3215_v28, %v5197_v16 }
 0x60a   : > { %v3217_v29 = vpop.f32.mrf.mxu0 }
 0x60b   : > { %v3085_v17 = vmul.f32 -1.442695, %v2605_v19  ;;  %v3218_v63 = vadd.f32 %v3217_v29, %v3216_v48 }
 0x60d   : > { %3599 = vpow2.f32 %v3085_v17  ;;  %v2608_v62 = vadd.f32 %v3218_v63, %v5197_v16 }
 0x60f   : > { %v3086_v46 = vmul.f32 -1.442695, %v2608_v62 }
 0x611   : > { %3601 = vpow2.f32 %v3086_v46 }
 0x612   : > { %v3596_v22 = vpop.eup %3595 }
 0x613   : > { %v2707_v18 = vadd.f32 1.0, %v3596_v22 }
 0x614   : > { %v3219_v40 = vpop.f32.mrf.mxu0 }
 0x615   : > { %3603 = vrcp.f32 %v2707_v18 }
 0x616   : > { %v3598_v47 = vpop.eup %3597  ;;  %v3220_v42 = vpop.f32.mrf.mxu0 }
 0x617   : > { %v2708_v2 = vadd.f32 1.0, %v3598_v47  ;;  %v3221_v34 = vadd.f32 %v3220_v42, %v3219_v40 }
 0x618   : > { %v3222_v1 = vpop.f32.mrf.mxu0 }
 0x619   : > { %3605 = vrcp.f32 %v2708_v2  ;;  %v2613_v37 = vadd.f32 %v3221_v34, %v5197_v16 }
 0x61a   : > { %v3600_v3 = vpop.eup %3599  ;;  %v3223_v60 = vpop.f32.mrf.mxu0 }
 0x61b   : > { %v2709_v55 = vadd.f32 1.0, %v3600_v3  ;;  %v3087_v23 = vmul.f32 -1.442695, %v2613_v37  ;;  %v3224_v54 = vadd.f32 %v3223_v60, %v3222_v1 }
 0x61c   : > { %v3225_v45 = vpop.f32.mrf.mxu0 }
 0x61d   : > { %3607 = vrcp.f32 %v2709_v55  ;;  %v2616_v43 = vadd.f32 %v3224_v54, %v5197_v16 }
 0x61e   : > { %v3602_v36 = vpop.eup %3601  ;;  %3609 = vpow2.f32 %v3087_v23  ;;  %v3226_v15 = vpop.f32.mrf.mxu0 }
 0x61f   : > { %v2710_v35 = vadd.f32 1.0, %v3602_v36  ;;  %v3088_v38 = vmul.f32 -1.442695, %v2616_v43  ;;  %v3227_v58 = vadd.f32 %v3226_v15, %v3225_v45 }
 0x620   : > { %v3228_v41 = vpop.f32.mrf.mxu0 }
 0x621   : > { %3611 = vrcp.f32 %v2710_v35  ;;  %v2621_v8 = vadd.f32 %v3227_v58, %v5197_v16 }
 0x622   : > { %v3604_v49 = vpop.eup %3603  ;;  %3613 = vpow2.f32 %v3088_v38  ;;  %v3229_v5 = vpop.f32.mrf.mxu0 }
 0x623   : > { %2755 = vst [vmem:[%s5207_s23] sm:$0xff] %v3604_v49  ;;  %v3089_v10 = vmul.f32 -1.442695, %v2621_v8  ;;  %v3230_v52 = vadd.f32 %v3229_v5, %v3228_v41 }
 0x625   : > { %3615 = vpow2.f32 %v3089_v10  ;;  %v2624_v12 = vadd.f32 %v3230_v52, %v5197_v16 }
 0x626   : > { %v3606_v53 = vpop.eup %3605  ;;  %v3231_v57 = vpop.f32.mrf.mxu0 }
 0x627   : > { %2756 = vst [vmem:[%s5207_s23 + $0x8] sm:$0xff] %v3606_v53  ;;  %v3090_v56 = vmul.f32 -1.442695, %v2624_v12 }
 0x628   : > { %v3232_v39 = vpop.f32.mrf.mxu0 }
 0x629   : > { %3617 = vpow2.f32 %v3090_v56  ;;  %v3233_v4 = vadd.f32 %v3232_v39, %v3231_v57 }
 0x62a   : > { %v3608_v61 = vpop.eup %3607  ;;  %v3234_v27 = vpop.f32.mrf.mxu0 }
 0x62b   : > { %v3610_v14 = vpop.eup %3609  ;;  %2757 = vst [vmem:[%s5207_s23 + $0x10] sm:$0xff] %v3608_v61  ;;  %v2629_v9 = vadd.f32 %v3233_v4, %v5197_v16 }
 0x62c   : > { %v2711_v6 = vadd.f32 1.0, %v3610_v14  ;;  %v3235_v31 = vpop.f32.mrf.mxu0 }
 0x62d   : > { %v3091_v11 = vmul.f32 -1.442695, %v2629_v9  ;;  %v3236_v25 = vadd.f32 %v3235_v31, %v3234_v27 }
 0x62e   : > { %v3612_v13 = vpop.eup %3611  ;;  %3619 = vrcp.f32 %v2711_v6  ;;  %v3237_v30 = vpop.f32.mrf.mxu0 }
 0x62f   : > { %v3614_v44 = vpop.eup %3613  ;;  %2758 = vst [vmem:[%s5207_s23 + $0x18] sm:$0xff] %v3612_v13  ;;  %3621 = vpow2.f32 %v3091_v11  ;;  %v2632_v50 = vadd.f32 %v3236_v25, %v5197_v16 }
 0x630   : > { %v2712_v51 = vadd.f32 1.0, %v3614_v44  ;;  %v3238_v20 = vpop.f32.mrf.mxu0 }
 0x631   : > { %v3092_v21 = vmul.f32 -1.442695, %v2632_v50  ;;  %v3239_v32 = vadd.f32 %v3238_v20, %v3237_v30 }
 0x632   : > { %3623 = vrcp.f32 %v2712_v51  ;;  %v3616_v26 = vpop.eup %3615  ;;  %v3240_v24 = vpop.f32.mrf.mxu0 }
 0x633   : > { %v2713_v33 = vadd.f32 1.0, %v3616_v26  ;;  %3625 = vpow2.f32 %v3092_v21  ;;  %v2637_v0 = vadd.f32 %v3239_v32, %v5197_v16 }
 0x634   : > { %v3241_v59 = vpop.f32.mrf.mxu0 }
 0x635   : > { %3627 = vrcp.f32 %v2713_v33  ;;  %v3093_v7 = vmul.f32 -1.442695, %v2637_v0  ;;  %v3242_v28 = vadd.f32 %v3241_v59, %v3240_v24 }
 0x636   : > { %v3618_v48 = vpop.eup %3617  ;;  %v3243_v19 = vpop.f32.mrf.mxu1 }
 0x637   : > { %v2714_v29 = vadd.f32 1.0, %v3618_v48  ;;  %3629 = vpow2.f32 %v3093_v7  ;;  %v2640_v17 = vadd.f32 %v3242_v28, %v5197_v16 }
 0x638   : > { %v3244_v63 = vpop.f32.mrf.mxu1 }
 0x639   : > { %3631 = vrcp.f32 %v2714_v29  ;;  %v3094_v62 = vmul.f32 -1.442695, %v2640_v17  ;;  %v3245_v46 = vadd.f32 %v3244_v63, %v3243_v19 }
 0x63a   : > { %v3246_v18 = vpop.f32.mrf.mxu1 }
 0x63b   : > { %v3620_v22 = vpop.eup %3619  ;;  %3633 = vpow2.f32 %v3094_v62  ;;  %v2645_v40 = vadd.f32 %v3245_v46, %v5197_v16 }
 0x63c   : > { %2759 = vst [vmem:[%s5207_s23 + $0x20] sm:$0xff] %v3620_v22  ;;  %v3622_v47 = vpop.eup %3621  ;;  %v3247_v2 = vpop.f32.mrf.mxu1 }
 0x63d   : > { %v2715_v42 = vadd.f32 1.0, %v3622_v47  ;;  %v3095_v34 = vmul.f32 -1.442695, %v2645_v40  ;;  %v3248_v1 = vadd.f32 %v3247_v2, %v3246_v18 }
 0x63f   : > { %v3624_v3 = vpop.eup %3623  ;;  %3635 = vrcp.f32 %v2715_v42  ;;  %v2648_v37 = vadd.f32 %v3248_v1, %v5197_v16 }
 0x640   : > { %2760 = vst [vmem:[%s5207_s23 + $0x28] sm:$0xff] %v3624_v3  ;;  %v3626_v55 = vpop.eup %3625  ;;  %3637 = vpow2.f32 %v3095_v34 }
 0x641   : > { %v2716_v60 = vadd.f32 1.0, %v3626_v55  ;;  %v3096_v23 = vmul.f32 -1.442695, %v2648_v37  ;;  %v3249_v54 = vpop.f32.mrf.mxu1 }
 0x642   : > { %v3628_v45 = vpop.eup %3627 }
 0x643   : > { %2761 = vst [vmem:[%s5207_s23 + $0x30] sm:$0xff] %v3628_v45  ;;  %3639 = vrcp.f32 %v2716_v60  ;;  %v3250_v36 = vpop.f32.mrf.mxu1 }
 0x644   : > { %v3630_v43 = vpop.eup %3629  ;;  %3641 = vpow2.f32 %v3096_v23  ;;  %v3251_v35 = vadd.f32 %v3250_v36, %v3249_v54 }
 0x645   : > { %v2717_v15 = vadd.f32 1.0, %v3630_v43  ;;  %v3252_v38 = vpop.f32.mrf.mxu1 }
 0x646   : > { %v3632_v58 = vpop.eup %3631  ;;  %v2653_v41 = vadd.f32 %v3251_v35, %v5197_v16 }
 0x647   : > { %2762 = vst [vmem:[%s5207_s23 + $0x38] sm:$0xff] %v3632_v58  ;;  %3643 = vrcp.f32 %v2717_v15  ;;  %v3253_v49 = vpop.f32.mrf.mxu1 }
 0x648   : > { %v3634_v8 = vpop.eup %3633  ;;  %v3097_v5 = vmul.f32 -1.442695, %v2653_v41  ;;  %v3254_v10 = vadd.f32 %v3253_v49, %v3252_v38 }
 0x649   : > { %v2718_v52 = vadd.f32 1.0, %v3634_v8 }
 0x64a   : > { %3645 = vpow2.f32 %v3097_v5  ;;  %v2656_v53 = vadd.f32 %v3254_v10, %v5197_v16 }
 0x64b   : > { %3647 = vrcp.f32 %v2718_v52 }
 0x64c   : > { %v3636_v12 = vpop.eup %3635  ;;  %v3098_v57 = vmul.f32 -1.442695, %v2656_v53 }
 0x64d   : > { %v3638_v56 = vpop.eup %3637  ;;  %2763 = vst [vmem:[%s5207_s23 + $0x40] sm:$0xff] %v3636_v12 }
 0x64e   : > { %v2719_v39 = vadd.f32 1.0, %v3638_v56  ;;  %3649 = vpow2.f32 %v3098_v57 }
 0x650   : > { %v3640_v61 = vpop.eup %3639  ;;  %3651 = vrcp.f32 %v2719_v39 }
 0x651   : > { %v3642_v4 = vpop.eup %3641  ;;  %2764 = vst [vmem:[%s5207_s23 + $0x48] sm:$0xff] %v3640_v61 }
 0x652   : > { %v2720_v14 = vadd.f32 1.0, %v3642_v4 }
 0x654   : > { %v3644_v27 = vpop.eup %3643  ;;  %3653 = vrcp.f32 %v2720_v14 }
 0x655   : > { %2765 = vst [vmem:[%s5207_s23 + $0x50] sm:$0xff] %v3644_v27 }
 0x657   : > { %v3646_v16 = vpop.eup %3645 }
 0x658   : > { %v3648_v6 = vpop.eup %3647  ;;  %v2721_v9 = vadd.f32 1.0, %v3646_v16 }
 0x659   : > { %2766 = vst [vmem:[%s5207_s23 + $0x58] sm:$0xff] %v3648_v6 }
 0x65a   : > { %3655 = vrcp.f32 %v2721_v9 }
 0x65b   : > { %v3650_v31 = vpop.eup %3649 }
 0x65c   : > { %v2722_v13 = vadd.f32 1.0, %v3650_v31 }
 0x65d   : > { %v3652_v11 = vpop.eup %3651 }
 0x65e   : > { %2767 = vst [vmem:[%s5207_s23 + $0x60] sm:$0xff] %v3652_v11  ;;  %3657 = vrcp.f32 %v2722_v13 }
 0x661   : > { %v3654_v25 = vpop.eup %3653 }
 0x662   : > { %2768 = vst [vmem:[%s5207_s23 + $0x68] sm:$0xff] %v3654_v25 }
 0x667   : > { %v3656_v44 = vpop.eup %3655 }
 0x668   : > { %2769 = vst [vmem:[%s5207_s23 + $0x70] sm:$0xff] %v3656_v44 }
 0x66b   : > { %v3658_v30 = vpop.eup %3657 }
 0x66c   : > { %2770 = vst [vmem:[%s5207_s23 + $0x78] sm:$0xff] %v3658_v30 }
 0x66d   : > { %3884 = shalt.err (!%p3881_p3)
}
 0x66e   : > { %s3885_s25 = scalar_lea.hbm %s5239_s22, 2048  ;;  %s3889_s4 = scalar_lea.hbm %s5377_s2, 4096 }
 0x66f   : > { %p3886_p7 = scmp.ne.s32.totalorder %s5239_s22, %s3885_s25  ;;  %p3890_p10 = scmp.lt.s32.totalorder %s5239_s22, %s5377_s2 }
 0x670   : > { %p3891_p0 = scmp.lt.s32.totalorder %s3889_s4, %s3885_s25 }
 0x671   : > { %p3887_p12 = pnand %p3886_p7, %p5375_p5 }
 0x672   : > { %p3892_p13 = por %p3891_p0, %p3890_p10 }
 0x673   : > { %p3888_p2 = pneg %p3887_p12 }
 0x675   : > { %p3893_p9 = pnand %p3892_p13, %p3888_p2 }
 0x677   : > { %3896 = shalt.err (!%p3893_p9)
}
 0x678   : > { %3328 = dma.vmem_to_hbm [thread:$0]  (%p5375_p5), %s5241_s18, 2048, %s5239_s22, %s2777_s13, %s3973_s12, %s3973_s12, %s3974_s20  }
 0x679 PF: > { %s5378_s10 = sld [smem:[#allocation24_spill]]  ;;  %p5381_p1 = scmp.ge.s32.totalorder %s3955_s21, 2 }
 0x67a   : > { %s5379_s23 = sld [smem:[#allocation28_spill]] }
 0x67f   : > { %s2821_s30 = sand.u32 1, %s5378_s10  }
 0x680   : > { %p5380_p11 = scmp.ne.s32.totalorder %s5379_s23, 0  ;;  %s2822_s26 = scalar_lea.sflag [#allocation4], %s2821_s30 }
 0x682   : > { %p3355_p4 = pnand %p5381_p1, %p5380_p11 }
 0x684   : > { %p3356_p6 = pneg %p3355_p4 }
 0x686   : > { %3934 = dma.done.wait (%p3356_p6), %s2822_s26, 2048  }
 0x687   : > { %3936 = vsyncadd (%p3356_p6), %s2822_s26, 4294965248  ;;  %s2831_s14 = scalar_lea.sflag [#allocation16], %s2821_s30 }
 0x688   : > { %3938 = dma.done.wait (%p3356_p6), %s2831_s14, 2048  }
 0x689   : > { %3940 = vsyncadd (%p3356_p6), %s2831_s14, 4294965248  ;;  %s5382_s21 = sld [smem:[#allocation26_spill]]  ;;  %s5385_s18 = smov %s3947_s19 }
 0x68a   : > { %s5383_s17 = sld [smem:[#allocation25_spill]] }
 0x68b   : > { %s5384_s20 = sld [smem:[#allocation27_spill]] }
 0x68f   : > { %p37_p5 = scmp.ge.s32.totalorder %s5382_s21, 4  }
 0x690   : > { %s5386_s19 = smov %s5383_s17 }
 0x691   :  { %39 = sbr.rel (!%p37_p5) target bundleno = 21 (0x15), region = 171 }
 0x696   :  { %2836 = vsyncpa [#allocation3], 1 }
 0x697   :  { %2838 = vsyncpa [#allocation3 + $0x1], 1 }
 0x698   :  { %2839 = vsyncpa [#allocation6], 1 }
 0x699   :  { %2841 = vsyncpa [#allocation6 + $0x1], 1 }
 0x69a   :  { %2842 = vsyncpa [#allocation9], 1 }
 0x69b   :  { %2843 = vsyncpa [#allocation12], 1 }
 0x69c   :  { %2844 = vsyncpa [#allocation4], 1 }
 0x69d   :  { %2846 = vsyncpa [#allocation4 + $0x1], 1 }
 0x69e   :  { %2847 = vsyncpa [#allocation16], 1 }
 0x69f   :  { %2849 = vsyncpa [#allocation16 + $0x1], 1 }

</bundles_post_ra>
